<compile_context>
chip_gen: v7x
topology: tpu7x:2x2x1
jax: 0.10.0
libtpu: 0.0.40
codegen_flags: <defaults>
</compile_context>

<pallas_src>
import functools

import jax
import jax.numpy as jnp
from jax import lax
from jax.experimental import pallas as pl
from jax.experimental.pallas import tpu as pltpu


# ---- packed parameter layout (single SMEM-resident f32 vector) -------------
# PyTorch shapes: fc1.weight [16,2], fc1.bias [16], fc2.weight [8,16],
# fc2.bias [8], fc3.weight [1,8], fc3.bias [1].
_W1_OFF = 0      # 32 values, w1[o, i] at o*2 + i
_B1_OFF = 32     # 16 values
_W2_OFF = 48     # 128 values, w2[o, i] at 48 + o*16 + i
_B2_OFF = 176    # 8 values
_W3_OFF = 184    # 8 values, w3[0, i] at 184 + i
_B3_OFF = 192    # 1 value
_N_THETA = 193


def _tree_dot(ws, hs, bias, fan_in=4):
    """sum_k ws[k] * hs[k] + bias with fan_in-wide partial accumulators
    (breaks the serial dependence chain so 4 VALU slots can co-issue)."""
    parts = []
    for s in range(0, len(ws), fan_in):
        acc = ws[s] * hs[s]
        for t in range(s + 1, min(s + fan_in, len(ws))):
            acc = acc + ws[t] * hs[t]
        parts.append(acc)
    tot = parts[0]
    for p in parts[1:]:
        tot = tot + p
    return tot + bias


def _make_kernel(block_rows, chunk_rows):
    n_inner = block_rows // chunk_rows

    def kernel(theta_ref, x_ref, o_ref):
        # theta_ref: SMEM f32[193]
        # x_ref    : VMEM f32[2, block_rows, 128]   (feature, row, lane)
        # o_ref    : VMEM f32[block_rows, 128]
        # Hoist every scalar weight read out of the row loop (SMEM loads).
        w1 = [[theta_ref[_W1_OFF + o * 2 + i] for i in range(2)] for o in range(16)]
        b1 = [theta_ref[_B1_OFF + o] for o in range(16)]
        w2 = [[theta_ref[_W2_OFF + o * 16 + i] for i in range(16)] for o in range(8)]
        b2 = [theta_ref[_B2_OFF + o] for o in range(8)]
        w3 = [theta_ref[_W3_OFF + i] for i in range(8)]
        b3 = theta_ref[_B3_OFF]

        def body(c, carry):
            r = pl.multiple_of(c * chunk_rows, chunk_rows)
            x0 = x_ref[0, pl.ds(r, chunk_rows), :]      # [chunk_rows, 128]
            x1 = x_ref[1, pl.ds(r, chunk_rows), :]

            # fc1 (2 -> 16) + ReLU: scalar-splat FMAs on full vregs.
            h1 = [jnp.maximum(w1[o][0] * x0 + w1[o][1] * x1 + b1[o], 0.0)
                  for o in range(16)]
            # fc2 (16 -> 8) + ReLU: tree-accumulated scalar-splat FMAs.
            h2 = [jnp.maximum(_tree_dot(w2[o], h1, b2[o]), 0.0) for o in range(8)]
            # fc3 (8 -> 1) + sigmoid (exp on the EUP slot).
            logits = _tree_dot(w3, h2, b3)
            o_ref[pl.ds(r, chunk_rows), :] = jax.nn.sigmoid(logits).astype(o_ref.dtype)
            return carry

        lax.fori_loop(0, n_inner, body, 0)

    return kernel


@functools.partial(jax.jit, static_argnames=("block_b", "chunk_rows"))
def indoor_outdoor_forward(x, params, *, block_b=65536, chunk_rows=8):
    """x: [B, 2] float32 -> [B, 1] float32 probability (PyTorch semantics)."""
    w1, b1, w2, b2, w3, b3 = params
    theta = jnp.concatenate([
        w1.reshape(-1), b1.reshape(-1),
        w2.reshape(-1), b2.reshape(-1),
        w3.reshape(-1), b3.reshape(-1),
    ]).astype(jnp.float32)                       # f32[193]

    B = x.shape[0]
    chunk = 128 * chunk_rows                     # 1024 rows = one f32 vreg/feature

    n_chunks = -(-B // chunk)                    # ceil
    blk_chunks = max(1, block_b // chunk)
    if n_chunks >= 2:
        # keep >=2 grid steps so megacore (v7x) / pipelining has work to shard
        blk_chunks = min(blk_chunks, -(-n_chunks // 2))
    blk_chunks = min(blk_chunks, n_chunks)
    grid_steps = -(-n_chunks // blk_chunks)
    block_rows = blk_chunks * chunk_rows         # rows of 128 lanes per grid step
    pB = grid_steps * blk_chunks * chunk         # padded batch

    # Layout plumbing (free): feature-major, then batch-dense [rows, 128].
    xt = jnp.pad(x.astype(jnp.float32).T, ((0, 0), (0, pB - B)))   # [2, pB]
    xs = xt.reshape(2, pB // 128, 128)

    cost = pl.CostEstimate(
        flops=336 * pB,                           # 2*(2*16 + 16*8 + 8*1) per row
        transcendentals=pB,                       # sigmoid exp
        bytes_accessed=12 * pB + 4 * _N_THETA,
    )

    out = pl.pallas_call(
        _make_kernel(block_rows, chunk_rows),
        out_shape=jax.ShapeDtypeStruct((pB // 128, 128), jnp.float32),
        grid=(grid_steps,),
        in_specs=[
            # all params in one tiny SMEM vector (single DMA, scalar reads)
            pl.BlockSpec(memory_space=pltpu.MemorySpace.SMEM),
            # batch-dense input tile, pipelined along the grid
            pl.BlockSpec((2, block_rows, 128), lambda i: (0, i, 0)),
        ],
        out_specs=pl.BlockSpec((block_rows, 128), lambda i: (i, 0)),
        compiler_params=pltpu.CompilerParams(
            dimension_semantics=("parallel",),    # megacore sharding on v7x
        ),
        cost_estimate=cost,
    )(theta, xs)

    # Back to PyTorch [B, 1]; drop the batch padding.
    return out.reshape(pB)[:B].reshape(B, 1)


def init_params(key):
    """PyTorch nn.Linear default init (uniform +-1/sqrt(fan_in)), PyTorch shapes."""
    def linear_init(k, out_f, in_f):
        kw, kb = jax.random.split(k)
        bound = 1.0 / (in_f ** 0.5)
        w = jax.random.uniform(kw, (out_f, in_f), jnp.float32, -bound, bound)
        b = jax.random.uniform(kb, (out_f,), jnp.float32, -bound, bound)
        return w, b

    k1, k2, k3 = jax.random.split(key, 3)
    w1, b1 = linear_init(k1, 16, 2)
    w2, b2 = linear_init(k2, 8, 16)
    w3, b3 = linear_init(k3, 1, 8)
    return (w1, b1, w2, b2, w3, b3)


def reference_forward(x, params):
    """Pure-JAX reference of the PyTorch forward."""
    w1, b1, w2, b2, w3, b3 = params
    h = jnp.maximum(x @ w1.T + b1, 0.0)          # [B, 16]
    h = jnp.maximum(h @ w2.T + b2, 0.0)          # [B, 8]
    return jax.nn.sigmoid(h @ w3.T + b3)         # [B, 1]


if __name__ == "__main__":
    key = jax.random.PRNGKey(0)
    kx, kp = jax.random.split(key)

    # Small example batch of (temperature-ish, humidity-ish) feature pairs.
    x = jax.random.normal(kx, (8, 2), jnp.float32)
    params = init_params(kp)

    out = jax.block_until_ready(indoor_outdoor_forward(x, params))
    ref = reference_forward(x, params)

    assert out.shape == (8, 1)
    assert jnp.allclose(out, ref, atol=1e-5, rtol=1e-5), "mismatch vs reference"

    print("KERNEL_OK")
</pallas_src>

<mosaic_0001>
module attributes {stable_mosaic.version = 11 : i64} {
  func.func @kernel(%arg0: i32, %arg1: memref<193xf32, #tpu.memory_space<smem>>, %arg2: memref<2x8x128xf32, #tpu.memory_space<vmem>>, %arg3: memref<8x128xf32, #tpu.memory_space<vmem>>) attributes {dimension_semantics = [#tpu.dimension_semantics<parallel>], iteration_bounds = array<i64: 1>, scalar_prefetch = 0 : i64, scratch_operands = 0 : i64, tpu.core_type = #tpu.core_type<tc>, window_params = [{transform_indices = @transform_0, window_bounds = array<i64: 193>}, {transform_indices = @transform_1, window_bounds = array<i64: 2, 8, 128>}, {transform_indices = @transform_2, window_bounds = array<i64: 8, 128>}]} {
    %c0 = arith.constant 0 : index
    %0 = memref.load %arg1[%c0] : memref<193xf32, #tpu.memory_space<smem>>
    %c1 = arith.constant 1 : index
    %1 = memref.load %arg1[%c1] : memref<193xf32, #tpu.memory_space<smem>>
    %c2 = arith.constant 2 : index
    %2 = memref.load %arg1[%c2] : memref<193xf32, #tpu.memory_space<smem>>
    %c3 = arith.constant 3 : index
    %3 = memref.load %arg1[%c3] : memref<193xf32, #tpu.memory_space<smem>>
    %c4 = arith.constant 4 : index
    %4 = memref.load %arg1[%c4] : memref<193xf32, #tpu.memory_space<smem>>
    %c5 = arith.constant 5 : index
    %5 = memref.load %arg1[%c5] : memref<193xf32, #tpu.memory_space<smem>>
    %c6 = arith.constant 6 : index
    %6 = memref.load %arg1[%c6] : memref<193xf32, #tpu.memory_space<smem>>
    %c7 = arith.constant 7 : index
    %7 = memref.load %arg1[%c7] : memref<193xf32, #tpu.memory_space<smem>>
    %c8 = arith.constant 8 : index
    %8 = memref.load %arg1[%c8] : memref<193xf32, #tpu.memory_space<smem>>
    %c9 = arith.constant 9 : index
    %9 = memref.load %arg1[%c9] : memref<193xf32, #tpu.memory_space<smem>>
    %c10 = arith.constant 10 : index
    %10 = memref.load %arg1[%c10] : memref<193xf32, #tpu.memory_space<smem>>
    %c11 = arith.constant 11 : index
    %11 = memref.load %arg1[%c11] : memref<193xf32, #tpu.memory_space<smem>>
    %c12 = arith.constant 12 : index
    %12 = memref.load %arg1[%c12] : memref<193xf32, #tpu.memory_space<smem>>
    %c13 = arith.constant 13 : index
    %13 = memref.load %arg1[%c13] : memref<193xf32, #tpu.memory_space<smem>>
    %c14 = arith.constant 14 : index
    %14 = memref.load %arg1[%c14] : memref<193xf32, #tpu.memory_space<smem>>
    %c15 = arith.constant 15 : index
    %15 = memref.load %arg1[%c15] : memref<193xf32, #tpu.memory_space<smem>>
    %c16 = arith.constant 16 : index
    %16 = memref.load %arg1[%c16] : memref<193xf32, #tpu.memory_space<smem>>
    %c17 = arith.constant 17 : index
    %17 = memref.load %arg1[%c17] : memref<193xf32, #tpu.memory_space<smem>>
    %c18 = arith.constant 18 : index
    %18 = memref.load %arg1[%c18] : memref<193xf32, #tpu.memory_space<smem>>
    %c19 = arith.constant 19 : index
    %19 = memref.load %arg1[%c19] : memref<193xf32, #tpu.memory_space<smem>>
    %c20 = arith.constant 20 : index
    %20 = memref.load %arg1[%c20] : memref<193xf32, #tpu.memory_space<smem>>
    %c21 = arith.constant 21 : index
    %21 = memref.load %arg1[%c21] : memref<193xf32, #tpu.memory_space<smem>>
    %c22 = arith.constant 22 : index
    %22 = memref.load %arg1[%c22] : memref<193xf32, #tpu.memory_space<smem>>
    %c23 = arith.constant 23 : index
    %23 = memref.load %arg1[%c23] : memref<193xf32, #tpu.memory_space<smem>>
    %c24 = arith.constant 24 : index
    %24 = memref.load %arg1[%c24] : memref<193xf32, #tpu.memory_space<smem>>
    %c25 = arith.constant 25 : index
    %25 = memref.load %arg1[%c25] : memref<193xf32, #tpu.memory_space<smem>>
    %c26 = arith.constant 26 : index
    %26 = memref.load %arg1[%c26] : memref<193xf32, #tpu.memory_space<smem>>
    %c27 = arith.constant 27 : index
    %27 = memref.load %arg1[%c27] : memref<193xf32, #tpu.memory_space<smem>>
    %c28 = arith.constant 28 : index
    %28 = memref.load %arg1[%c28] : memref<193xf32, #tpu.memory_space<smem>>
    %c29 = arith.constant 29 : index
    %29 = memref.load %arg1[%c29] : memref<193xf32, #tpu.memory_space<smem>>
    %c30 = arith.constant 30 : index
    %30 = memref.load %arg1[%c30] : memref<193xf32, #tpu.memory_space<smem>>
    %c31 = arith.constant 31 : index
    %31 = memref.load %arg1[%c31] : memref<193xf32, #tpu.memory_space<smem>>
    %c32 = arith.constant 32 : index
    %32 = memref.load %arg1[%c32] : memref<193xf32, #tpu.memory_space<smem>>
    %c33 = arith.constant 33 : index
    %33 = memref.load %arg1[%c33] : memref<193xf32, #tpu.memory_space<smem>>
    %c34 = arith.constant 34 : index
    %34 = memref.load %arg1[%c34] : memref<193xf32, #tpu.memory_space<smem>>
    %c35 = arith.constant 35 : index
    %35 = memref.load %arg1[%c35] : memref<193xf32, #tpu.memory_space<smem>>
    %c36 = arith.constant 36 : index
    %36 = memref.load %arg1[%c36] : memref<193xf32, #tpu.memory_space<smem>>
    %c37 = arith.constant 37 : index
    %37 = memref.load %arg1[%c37] : memref<193xf32, #tpu.memory_space<smem>>
    %c38 = arith.constant 38 : index
    %38 = memref.load %arg1[%c38] : memref<193xf32, #tpu.memory_space<smem>>
    %c39 = arith.constant 39 : index
    %39 = memref.load %arg1[%c39] : memref<193xf32, #tpu.memory_space<smem>>
    %c40 = arith.constant 40 : index
    %40 = memref.load %arg1[%c40] : memref<193xf32, #tpu.memory_space<smem>>
    %c41 = arith.constant 41 : index
    %41 = memref.load %arg1[%c41] : memref<193xf32, #tpu.memory_space<smem>>
    %c42 = arith.constant 42 : index
    %42 = memref.load %arg1[%c42] : memref<193xf32, #tpu.memory_space<smem>>
    %c43 = arith.constant 43 : index
    %43 = memref.load %arg1[%c43] : memref<193xf32, #tpu.memory_space<smem>>
    %c44 = arith.constant 44 : index
    %44 = memref.load %arg1[%c44] : memref<193xf32, #tpu.memory_space<smem>>
    %c45 = arith.constant 45 : index
    %45 = memref.load %arg1[%c45] : memref<193xf32, #tpu.memory_space<smem>>
    %c46 = arith.constant 46 : index
    %46 = memref.load %arg1[%c46] : memref<193xf32, #tpu.memory_space<smem>>
    %c47 = arith.constant 47 : index
    %47 = memref.load %arg1[%c47] : memref<193xf32, #tpu.memory_space<smem>>
    %c48 = arith.constant 48 : index
    %48 = memref.load %arg1[%c48] : memref<193xf32, #tpu.memory_space<smem>>
    %c49 = arith.constant 49 : index
    %49 = memref.load %arg1[%c49] : memref<193xf32, #tpu.memory_space<smem>>
    %c50 = arith.constant 50 : index
    %50 = memref.load %arg1[%c50] : memref<193xf32, #tpu.memory_space<smem>>
    %c51 = arith.constant 51 : index
    %51 = memref.load %arg1[%c51] : memref<193xf32, #tpu.memory_space<smem>>
    %c52 = arith.constant 52 : index
    %52 = memref.load %arg1[%c52] : memref<193xf32, #tpu.memory_space<smem>>
    %c53 = arith.constant 53 : index
    %53 = memref.load %arg1[%c53] : memref<193xf32, #tpu.memory_space<smem>>
    %c54 = arith.constant 54 : index
    %54 = memref.load %arg1[%c54] : memref<193xf32, #tpu.memory_space<smem>>
    %c55 = arith.constant 55 : index
    %55 = memref.load %arg1[%c55] : memref<193xf32, #tpu.memory_space<smem>>
    %c56 = arith.constant 56 : index
    %56 = memref.load %arg1[%c56] : memref<193xf32, #tpu.memory_space<smem>>
    %c57 = arith.constant 57 : index
    %57 = memref.load %arg1[%c57] : memref<193xf32, #tpu.memory_space<smem>>
    %c58 = arith.constant 58 : index
    %58 = memref.load %arg1[%c58] : memref<193xf32, #tpu.memory_space<smem>>
    %c59 = arith.constant 59 : index
    %59 = memref.load %arg1[%c59] : memref<193xf32, #tpu.memory_space<smem>>
    %c60 = arith.constant 60 : index
    %60 = memref.load %arg1[%c60] : memref<193xf32, #tpu.memory_space<smem>>
    %c61 = arith.constant 61 : index
    %61 = memref.load %arg1[%c61] : memref<193xf32, #tpu.memory_space<smem>>
    %c62 = arith.constant 62 : index
    %62 = memref.load %arg1[%c62] : memref<193xf32, #tpu.memory_space<smem>>
    %c63 = arith.constant 63 : index
    %63 = memref.load %arg1[%c63] : memref<193xf32, #tpu.memory_space<smem>>
    %c64 = arith.constant 64 : index
    %64 = memref.load %arg1[%c64] : memref<193xf32, #tpu.memory_space<smem>>
    %c65 = arith.constant 65 : index
    %65 = memref.load %arg1[%c65] : memref<193xf32, #tpu.memory_space<smem>>
    %c66 = arith.constant 66 : index
    %66 = memref.load %arg1[%c66] : memref<193xf32, #tpu.memory_space<smem>>
    %c67 = arith.constant 67 : index
    %67 = memref.load %arg1[%c67] : memref<193xf32, #tpu.memory_space<smem>>
    %c68 = arith.constant 68 : index
    %68 = memref.load %arg1[%c68] : memref<193xf32, #tpu.memory_space<smem>>
    %c69 = arith.constant 69 : index
    %69 = memref.load %arg1[%c69] : memref<193xf32, #tpu.memory_space<smem>>
    %c70 = arith.constant 70 : index
    %70 = memref.load %arg1[%c70] : memref<193xf32, #tpu.memory_space<smem>>
    %c71 = arith.constant 71 : index
    %71 = memref.load %arg1[%c71] : memref<193xf32, #tpu.memory_space<smem>>
    %c72 = arith.constant 72 : index
    %72 = memref.load %arg1[%c72] : memref<193xf32, #tpu.memory_space<smem>>
    %c73 = arith.constant 73 : index
    %73 = memref.load %arg1[%c73] : memref<193xf32, #tpu.memory_space<smem>>
    %c74 = arith.constant 74 : index
    %74 = memref.load %arg1[%c74] : memref<193xf32, #tpu.memory_space<smem>>
    %c75 = arith.constant 75 : index
    %75 = memref.load %arg1[%c75] : memref<193xf32, #tpu.memory_space<smem>>
    %c76 = arith.constant 76 : index
    %76 = memref.load %arg1[%c76] : memref<193xf32, #tpu.memory_space<smem>>
    %c77 = arith.constant 77 : index
    %77 = memref.load %arg1[%c77] : memref<193xf32, #tpu.memory_space<smem>>
    %c78 = arith.constant 78 : index
    %78 = memref.load %arg1[%c78] : memref<193xf32, #tpu.memory_space<smem>>
    %c79 = arith.constant 79 : index
    %79 = memref.load %arg1[%c79] : memref<193xf32, #tpu.memory_space<smem>>
    %c80 = arith.constant 80 : index
    %80 = memref.load %arg1[%c80] : memref<193xf32, #tpu.memory_space<smem>>
    %c81 = arith.constant 81 : index
    %81 = memref.load %arg1[%c81] : memref<193xf32, #tpu.memory_space<smem>>
    %c82 = arith.constant 82 : index
    %82 = memref.load %arg1[%c82] : memref<193xf32, #tpu.memory_space<smem>>
    %c83 = arith.constant 83 : index
    %83 = memref.load %arg1[%c83] : memref<193xf32, #tpu.memory_space<smem>>
    %c84 = arith.constant 84 : index
    %84 = memref.load %arg1[%c84] : memref<193xf32, #tpu.memory_space<smem>>
    %c85 = arith.constant 85 : index
    %85 = memref.load %arg1[%c85] : memref<193xf32, #tpu.memory_space<smem>>
    %c86 = arith.constant 86 : index
    %86 = memref.load %arg1[%c86] : memref<193xf32, #tpu.memory_space<smem>>
    %c87 = arith.constant 87 : index
    %87 = memref.load %arg1[%c87] : memref<193xf32, #tpu.memory_space<smem>>
    %c88 = arith.constant 88 : index
    %88 = memref.load %arg1[%c88] : memref<193xf32, #tpu.memory_space<smem>>
    %c89 = arith.constant 89 : index
    %89 = memref.load %arg1[%c89] : memref<193xf32, #tpu.memory_space<smem>>
    %c90 = arith.constant 90 : index
    %90 = memref.load %arg1[%c90] : memref<193xf32, #tpu.memory_space<smem>>
    %c91 = arith.constant 91 : index
    %91 = memref.load %arg1[%c91] : memref<193xf32, #tpu.memory_space<smem>>
    %c92 = arith.constant 92 : index
    %92 = memref.load %arg1[%c92] : memref<193xf32, #tpu.memory_space<smem>>
    %c93 = arith.constant 93 : index
    %93 = memref.load %arg1[%c93] : memref<193xf32, #tpu.memory_space<smem>>
    %c94 = arith.constant 94 : index
    %94 = memref.load %arg1[%c94] : memref<193xf32, #tpu.memory_space<smem>>
    %c95 = arith.constant 95 : index
    %95 = memref.load %arg1[%c95] : memref<193xf32, #tpu.memory_space<smem>>
    %c96 = arith.constant 96 : index
    %96 = memref.load %arg1[%c96] : memref<193xf32, #tpu.memory_space<smem>>
    %c97 = arith.constant 97 : index
    %97 = memref.load %arg1[%c97] : memref<193xf32, #tpu.memory_space<smem>>
    %c98 = arith.constant 98 : index
    %98 = memref.load %arg1[%c98] : memref<193xf32, #tpu.memory_space<smem>>
    %c99 = arith.constant 99 : index
    %99 = memref.load %arg1[%c99] : memref<193xf32, #tpu.memory_space<smem>>
    %c100 = arith.constant 100 : index
    %100 = memref.load %arg1[%c100] : memref<193xf32, #tpu.memory_space<smem>>
    %c101 = arith.constant 101 : index
    %101 = memref.load %arg1[%c101] : memref<193xf32, #tpu.memory_space<smem>>
    %c102 = arith.constant 102 : index
    %102 = memref.load %arg1[%c102] : memref<193xf32, #tpu.memory_space<smem>>
    %c103 = arith.constant 103 : index
    %103 = memref.load %arg1[%c103] : memref<193xf32, #tpu.memory_space<smem>>
    %c104 = arith.constant 104 : index
    %104 = memref.load %arg1[%c104] : memref<193xf32, #tpu.memory_space<smem>>
    %c105 = arith.constant 105 : index
    %105 = memref.load %arg1[%c105] : memref<193xf32, #tpu.memory_space<smem>>
    %c106 = arith.constant 106 : index
    %106 = memref.load %arg1[%c106] : memref<193xf32, #tpu.memory_space<smem>>
    %c107 = arith.constant 107 : index
    %107 = memref.load %arg1[%c107] : memref<193xf32, #tpu.memory_space<smem>>
    %c108 = arith.constant 108 : index
    %108 = memref.load %arg1[%c108] : memref<193xf32, #tpu.memory_space<smem>>
    %c109 = arith.constant 109 : index
    %109 = memref.load %arg1[%c109] : memref<193xf32, #tpu.memory_space<smem>>
    %c110 = arith.constant 110 : index
    %110 = memref.load %arg1[%c110] : memref<193xf32, #tpu.memory_space<smem>>
    %c111 = arith.constant 111 : index
    %111 = memref.load %arg1[%c111] : memref<193xf32, #tpu.memory_space<smem>>
    %c112 = arith.constant 112 : index
    %112 = memref.load %arg1[%c112] : memref<193xf32, #tpu.memory_space<smem>>
    %c113 = arith.constant 113 : index
    %113 = memref.load %arg1[%c113] : memref<193xf32, #tpu.memory_space<smem>>
    %c114 = arith.constant 114 : index
    %114 = memref.load %arg1[%c114] : memref<193xf32, #tpu.memory_space<smem>>
    %c115 = arith.constant 115 : index
    %115 = memref.load %arg1[%c115] : memref<193xf32, #tpu.memory_space<smem>>
    %c116 = arith.constant 116 : index
    %116 = memref.load %arg1[%c116] : memref<193xf32, #tpu.memory_space<smem>>
    %c117 = arith.constant 117 : index
    %117 = memref.load %arg1[%c117] : memref<193xf32, #tpu.memory_space<smem>>
    %c118 = arith.constant 118 : index
    %118 = memref.load %arg1[%c118] : memref<193xf32, #tpu.memory_space<smem>>
    %c119 = arith.constant 119 : index
    %119 = memref.load %arg1[%c119] : memref<193xf32, #tpu.memory_space<smem>>
    %c120 = arith.constant 120 : index
    %120 = memref.load %arg1[%c120] : memref<193xf32, #tpu.memory_space<smem>>
    %c121 = arith.constant 121 : index
    %121 = memref.load %arg1[%c121] : memref<193xf32, #tpu.memory_space<smem>>
    %c122 = arith.constant 122 : index
    %122 = memref.load %arg1[%c122] : memref<193xf32, #tpu.memory_space<smem>>
    %c123 = arith.constant 123 : index
    %123 = memref.load %arg1[%c123] : memref<193xf32, #tpu.memory_space<smem>>
    %c124 = arith.constant 124 : index
    %124 = memref.load %arg1[%c124] : memref<193xf32, #tpu.memory_space<smem>>
    %c125 = arith.constant 125 : index
    %125 = memref.load %arg1[%c125] : memref<193xf32, #tpu.memory_space<smem>>
    %c126 = arith.constant 126 : index
    %126 = memref.load %arg1[%c126] : memref<193xf32, #tpu.memory_space<smem>>
    %c127 = arith.constant 127 : index
    %127 = memref.load %arg1[%c127] : memref<193xf32, #tpu.memory_space<smem>>
    %c128 = arith.constant 128 : index
    %128 = memref.load %arg1[%c128] : memref<193xf32, #tpu.memory_space<smem>>
    %c129 = arith.constant 129 : index
    %129 = memref.load %arg1[%c129] : memref<193xf32, #tpu.memory_space<smem>>
    %c130 = arith.constant 130 : index
    %130 = memref.load %arg1[%c130] : memref<193xf32, #tpu.memory_space<smem>>
    %c131 = arith.constant 131 : index
    %131 = memref.load %arg1[%c131] : memref<193xf32, #tpu.memory_space<smem>>
    %c132 = arith.constant 132 : index
    %132 = memref.load %arg1[%c132] : memref<193xf32, #tpu.memory_space<smem>>
    %c133 = arith.constant 133 : index
    %133 = memref.load %arg1[%c133] : memref<193xf32, #tpu.memory_space<smem>>
    %c134 = arith.constant 134 : index
    %134 = memref.load %arg1[%c134] : memref<193xf32, #tpu.memory_space<smem>>
    %c135 = arith.constant 135 : index
    %135 = memref.load %arg1[%c135] : memref<193xf32, #tpu.memory_space<smem>>
    %c136 = arith.constant 136 : index
    %136 = memref.load %arg1[%c136] : memref<193xf32, #tpu.memory_space<smem>>
    %c137 = arith.constant 137 : index
    %137 = memref.load %arg1[%c137] : memref<193xf32, #tpu.memory_space<smem>>
    %c138 = arith.constant 138 : index
    %138 = memref.load %arg1[%c138] : memref<193xf32, #tpu.memory_space<smem>>
    %c139 = arith.constant 139 : index
    %139 = memref.load %arg1[%c139] : memref<193xf32, #tpu.memory_space<smem>>
    %c140 = arith.constant 140 : index
    %140 = memref.load %arg1[%c140] : memref<193xf32, #tpu.memory_space<smem>>
    %c141 = arith.constant 141 : index
    %141 = memref.load %arg1[%c141] : memref<193xf32, #tpu.memory_space<smem>>
    %c142 = arith.constant 142 : index
    %142 = memref.load %arg1[%c142] : memref<193xf32, #tpu.memory_space<smem>>
    %c143 = arith.constant 143 : index
    %143 = memref.load %arg1[%c143] : memref<193xf32, #tpu.memory_space<smem>>
    %c144 = arith.constant 144 : index
    %144 = memref.load %arg1[%c144] : memref<193xf32, #tpu.memory_space<smem>>
    %c145 = arith.constant 145 : index
    %145 = memref.load %arg1[%c145] : memref<193xf32, #tpu.memory_space<smem>>
    %c146 = arith.constant 146 : index
    %146 = memref.load %arg1[%c146] : memref<193xf32, #tpu.memory_space<smem>>
    %c147 = arith.constant 147 : index
    %147 = memref.load %arg1[%c147] : memref<193xf32, #tpu.memory_space<smem>>
    %c148 = arith.constant 148 : index
    %148 = memref.load %arg1[%c148] : memref<193xf32, #tpu.memory_space<smem>>
    %c149 = arith.constant 149 : index
    %149 = memref.load %arg1[%c149] : memref<193xf32, #tpu.memory_space<smem>>
    %c150 = arith.constant 150 : index
    %150 = memref.load %arg1[%c150] : memref<193xf32, #tpu.memory_space<smem>>
    %c151 = arith.constant 151 : index
    %151 = memref.load %arg1[%c151] : memref<193xf32, #tpu.memory_space<smem>>
    %c152 = arith.constant 152 : index
    %152 = memref.load %arg1[%c152] : memref<193xf32, #tpu.memory_space<smem>>
    %c153 = arith.constant 153 : index
    %153 = memref.load %arg1[%c153] : memref<193xf32, #tpu.memory_space<smem>>
    %c154 = arith.constant 154 : index
    %154 = memref.load %arg1[%c154] : memref<193xf32, #tpu.memory_space<smem>>
    %c155 = arith.constant 155 : index
    %155 = memref.load %arg1[%c155] : memref<193xf32, #tpu.memory_space<smem>>
    %c156 = arith.constant 156 : index
    %156 = memref.load %arg1[%c156] : memref<193xf32, #tpu.memory_space<smem>>
    %c157 = arith.constant 157 : index
    %157 = memref.load %arg1[%c157] : memref<193xf32, #tpu.memory_space<smem>>
    %c158 = arith.constant 158 : index
    %158 = memref.load %arg1[%c158] : memref<193xf32, #tpu.memory_space<smem>>
    %c159 = arith.constant 159 : index
    %159 = memref.load %arg1[%c159] : memref<193xf32, #tpu.memory_space<smem>>
    %c160 = arith.constant 160 : index
    %160 = memref.load %arg1[%c160] : memref<193xf32, #tpu.memory_space<smem>>
    %c161 = arith.constant 161 : index
    %161 = memref.load %arg1[%c161] : memref<193xf32, #tpu.memory_space<smem>>
    %c162 = arith.constant 162 : index
    %162 = memref.load %arg1[%c162] : memref<193xf32, #tpu.memory_space<smem>>
    %c163 = arith.constant 163 : index
    %163 = memref.load %arg1[%c163] : memref<193xf32, #tpu.memory_space<smem>>
    %c164 = arith.constant 164 : index
    %164 = memref.load %arg1[%c164] : memref<193xf32, #tpu.memory_space<smem>>
    %c165 = arith.constant 165 : index
    %165 = memref.load %arg1[%c165] : memref<193xf32, #tpu.memory_space<smem>>
    %c166 = arith.constant 166 : index
    %166 = memref.load %arg1[%c166] : memref<193xf32, #tpu.memory_space<smem>>
    %c167 = arith.constant 167 : index
    %167 = memref.load %arg1[%c167] : memref<193xf32, #tpu.memory_space<smem>>
    %c168 = arith.constant 168 : index
    %168 = memref.load %arg1[%c168] : memref<193xf32, #tpu.memory_space<smem>>
    %c169 = arith.constant 169 : index
    %169 = memref.load %arg1[%c169] : memref<193xf32, #tpu.memory_space<smem>>
    %c170 = arith.constant 170 : index
    %170 = memref.load %arg1[%c170] : memref<193xf32, #tpu.memory_space<smem>>
    %c171 = arith.constant 171 : index
    %171 = memref.load %arg1[%c171] : memref<193xf32, #tpu.memory_space<smem>>
    %c172 = arith.constant 172 : index
    %172 = memref.load %arg1[%c172] : memref<193xf32, #tpu.memory_space<smem>>
    %c173 = arith.constant 173 : index
    %173 = memref.load %arg1[%c173] : memref<193xf32, #tpu.memory_space<smem>>
    %c174 = arith.constant 174 : index
    %174 = memref.load %arg1[%c174] : memref<193xf32, #tpu.memory_space<smem>>
    %c175 = arith.constant 175 : index
    %175 = memref.load %arg1[%c175] : memref<193xf32, #tpu.memory_space<smem>>
    %c176 = arith.constant 176 : index
    %176 = memref.load %arg1[%c176] : memref<193xf32, #tpu.memory_space<smem>>
    %c177 = arith.constant 177 : index
    %177 = memref.load %arg1[%c177] : memref<193xf32, #tpu.memory_space<smem>>
    %c178 = arith.constant 178 : index
    %178 = memref.load %arg1[%c178] : memref<193xf32, #tpu.memory_space<smem>>
    %c179 = arith.constant 179 : index
    %179 = memref.load %arg1[%c179] : memref<193xf32, #tpu.memory_space<smem>>
    %c180 = arith.constant 180 : index
    %180 = memref.load %arg1[%c180] : memref<193xf32, #tpu.memory_space<smem>>
    %c181 = arith.constant 181 : index
    %181 = memref.load %arg1[%c181] : memref<193xf32, #tpu.memory_space<smem>>
    %c182 = arith.constant 182 : index
    %182 = memref.load %arg1[%c182] : memref<193xf32, #tpu.memory_space<smem>>
    %c183 = arith.constant 183 : index
    %183 = memref.load %arg1[%c183] : memref<193xf32, #tpu.memory_space<smem>>
    %c184 = arith.constant 184 : index
    %184 = memref.load %arg1[%c184] : memref<193xf32, #tpu.memory_space<smem>>
    %c185 = arith.constant 185 : index
    %185 = memref.load %arg1[%c185] : memref<193xf32, #tpu.memory_space<smem>>
    %c186 = arith.constant 186 : index
    %186 = memref.load %arg1[%c186] : memref<193xf32, #tpu.memory_space<smem>>
    %c187 = arith.constant 187 : index
    %187 = memref.load %arg1[%c187] : memref<193xf32, #tpu.memory_space<smem>>
    %c188 = arith.constant 188 : index
    %188 = memref.load %arg1[%c188] : memref<193xf32, #tpu.memory_space<smem>>
    %c189 = arith.constant 189 : index
    %189 = memref.load %arg1[%c189] : memref<193xf32, #tpu.memory_space<smem>>
    %c190 = arith.constant 190 : index
    %190 = memref.load %arg1[%c190] : memref<193xf32, #tpu.memory_space<smem>>
    %c191 = arith.constant 191 : index
    %191 = memref.load %arg1[%c191] : memref<193xf32, #tpu.memory_space<smem>>
    %c192 = arith.constant 192 : index
    %192 = memref.load %arg1[%c192] : memref<193xf32, #tpu.memory_space<smem>>
    %c0_i32 = arith.constant 0 : i32
    %c8_i32 = arith.constant 8 : i32
    %193 = arith.muli %c0_i32, %c8_i32 : i32
    %194 = tpu.assume_multiple %193, 8 : i32
    %c0_0 = arith.constant 0 : index
    %195 = arith.index_cast %194 : i32 to index
    %c0_1 = arith.constant 0 : index
    %196 = vector.load %arg2[%c0_0, %195, %c0_1] : memref<2x8x128xf32, #tpu.memory_space<vmem>>, vector<1x8x128xf32>
    %197 = vector.shape_cast %196 : vector<1x8x128xf32> to vector<8x128xf32>
    %c1_2 = arith.constant 1 : index
    %198 = arith.index_cast %194 : i32 to index
    %c0_3 = arith.constant 0 : index
    %199 = vector.load %arg2[%c1_2, %198, %c0_3] : memref<2x8x128xf32, #tpu.memory_space<vmem>>, vector<1x8x128xf32>
    %200 = vector.shape_cast %199 : vector<1x8x128xf32> to vector<8x128xf32>
    %201 = vector.broadcast %0 : f32 to vector<8x128xf32>
    %202 = arith.mulf %201, %197 : vector<8x128xf32>
    %203 = vector.broadcast %1 : f32 to vector<8x128xf32>
    %204 = arith.mulf %203, %200 : vector<8x128xf32>
    %205 = arith.addf %202, %204 : vector<8x128xf32>
    %206 = vector.broadcast %32 : f32 to vector<8x128xf32>
    %207 = arith.addf %205, %206 : vector<8x128xf32>
    %cst = arith.constant 0.000000e+00 : f32
    %208 = vector.broadcast %cst : f32 to vector<8x128xf32>
    %209 = arith.maximumf %207, %208 : vector<8x128xf32>
    %210 = vector.broadcast %2 : f32 to vector<8x128xf32>
    %211 = arith.mulf %210, %197 : vector<8x128xf32>
    %212 = vector.broadcast %3 : f32 to vector<8x128xf32>
    %213 = arith.mulf %212, %200 : vector<8x128xf32>
    %214 = arith.addf %211, %213 : vector<8x128xf32>
    %215 = vector.broadcast %33 : f32 to vector<8x128xf32>
    %216 = arith.addf %214, %215 : vector<8x128xf32>
    %cst_4 = arith.constant 0.000000e+00 : f32
    %217 = vector.broadcast %cst_4 : f32 to vector<8x128xf32>
    %218 = arith.maximumf %216, %217 : vector<8x128xf32>
    %219 = vector.broadcast %4 : f32 to vector<8x128xf32>
    %220 = arith.mulf %219, %197 : vector<8x128xf32>
    %221 = vector.broadcast %5 : f32 to vector<8x128xf32>
    %222 = arith.mulf %221, %200 : vector<8x128xf32>
    %223 = arith.addf %220, %222 : vector<8x128xf32>
    %224 = vector.broadcast %34 : f32 to vector<8x128xf32>
    %225 = arith.addf %223, %224 : vector<8x128xf32>
    %cst_5 = arith.constant 0.000000e+00 : f32
    %226 = vector.broadcast %cst_5 : f32 to vector<8x128xf32>
    %227 = arith.maximumf %225, %226 : vector<8x128xf32>
    %228 = vector.broadcast %6 : f32 to vector<8x128xf32>
    %229 = arith.mulf %228, %197 : vector<8x128xf32>
    %230 = vector.broadcast %7 : f32 to vector<8x128xf32>
    %231 = arith.mulf %230, %200 : vector<8x128xf32>
    %232 = arith.addf %229, %231 : vector<8x128xf32>
    %233 = vector.broadcast %35 : f32 to vector<8x128xf32>
    %234 = arith.addf %232, %233 : vector<8x128xf32>
    %cst_6 = arith.constant 0.000000e+00 : f32
    %235 = vector.broadcast %cst_6 : f32 to vector<8x128xf32>
    %236 = arith.maximumf %234, %235 : vector<8x128xf32>
    %237 = vector.broadcast %8 : f32 to vector<8x128xf32>
    %238 = arith.mulf %237, %197 : vector<8x128xf32>
    %239 = vector.broadcast %9 : f32 to vector<8x128xf32>
    %240 = arith.mulf %239, %200 : vector<8x128xf32>
    %241 = arith.addf %238, %240 : vector<8x128xf32>
    %242 = vector.broadcast %36 : f32 to vector<8x128xf32>
    %243 = arith.addf %241, %242 : vector<8x128xf32>
    %cst_7 = arith.constant 0.000000e+00 : f32
    %244 = vector.broadcast %cst_7 : f32 to vector<8x128xf32>
    %245 = arith.maximumf %243, %244 : vector<8x128xf32>
    %246 = vector.broadcast %10 : f32 to vector<8x128xf32>
    %247 = arith.mulf %246, %197 : vector<8x128xf32>
    %248 = vector.broadcast %11 : f32 to vector<8x128xf32>
    %249 = arith.mulf %248, %200 : vector<8x128xf32>
    %250 = arith.addf %247, %249 : vector<8x128xf32>
    %251 = vector.broadcast %37 : f32 to vector<8x128xf32>
    %252 = arith.addf %250, %251 : vector<8x128xf32>
    %cst_8 = arith.constant 0.000000e+00 : f32
    %253 = vector.broadcast %cst_8 : f32 to vector<8x128xf32>
    %254 = arith.maximumf %252, %253 : vector<8x128xf32>
    %255 = vector.broadcast %12 : f32 to vector<8x128xf32>
    %256 = arith.mulf %255, %197 : vector<8x128xf32>
    %257 = vector.broadcast %13 : f32 to vector<8x128xf32>
    %258 = arith.mulf %257, %200 : vector<8x128xf32>
    %259 = arith.addf %256, %258 : vector<8x128xf32>
    %260 = vector.broadcast %38 : f32 to vector<8x128xf32>
    %261 = arith.addf %259, %260 : vector<8x128xf32>
    %cst_9 = arith.constant 0.000000e+00 : f32
    %262 = vector.broadcast %cst_9 : f32 to vector<8x128xf32>
    %263 = arith.maximumf %261, %262 : vector<8x128xf32>
    %264 = vector.broadcast %14 : f32 to vector<8x128xf32>
    %265 = arith.mulf %264, %197 : vector<8x128xf32>
    %266 = vector.broadcast %15 : f32 to vector<8x128xf32>
    %267 = arith.mulf %266, %200 : vector<8x128xf32>
    %268 = arith.addf %265, %267 : vector<8x128xf32>
    %269 = vector.broadcast %39 : f32 to vector<8x128xf32>
    %270 = arith.addf %268, %269 : vector<8x128xf32>
    %cst_10 = arith.constant 0.000000e+00 : f32
    %271 = vector.broadcast %cst_10 : f32 to vector<8x128xf32>
    %272 = arith.maximumf %270, %271 : vector<8x128xf32>
    %273 = vector.broadcast %16 : f32 to vector<8x128xf32>
    %274 = arith.mulf %273, %197 : vector<8x128xf32>
    %275 = vector.broadcast %17 : f32 to vector<8x128xf32>
    %276 = arith.mulf %275, %200 : vector<8x128xf32>
    %277 = arith.addf %274, %276 : vector<8x128xf32>
    %278 = vector.broadcast %40 : f32 to vector<8x128xf32>
    %279 = arith.addf %277, %278 : vector<8x128xf32>
    %cst_11 = arith.constant 0.000000e+00 : f32
    %280 = vector.broadcast %cst_11 : f32 to vector<8x128xf32>
    %281 = arith.maximumf %279, %280 : vector<8x128xf32>
    %282 = vector.broadcast %18 : f32 to vector<8x128xf32>
    %283 = arith.mulf %282, %197 : vector<8x128xf32>
    %284 = vector.broadcast %19 : f32 to vector<8x128xf32>
    %285 = arith.mulf %284, %200 : vector<8x128xf32>
    %286 = arith.addf %283, %285 : vector<8x128xf32>
    %287 = vector.broadcast %41 : f32 to vector<8x128xf32>
    %288 = arith.addf %286, %287 : vector<8x128xf32>
    %cst_12 = arith.constant 0.000000e+00 : f32
    %289 = vector.broadcast %cst_12 : f32 to vector<8x128xf32>
    %290 = arith.maximumf %288, %289 : vector<8x128xf32>
    %291 = vector.broadcast %20 : f32 to vector<8x128xf32>
    %292 = arith.mulf %291, %197 : vector<8x128xf32>
    %293 = vector.broadcast %21 : f32 to vector<8x128xf32>
    %294 = arith.mulf %293, %200 : vector<8x128xf32>
    %295 = arith.addf %292, %294 : vector<8x128xf32>
    %296 = vector.broadcast %42 : f32 to vector<8x128xf32>
    %297 = arith.addf %295, %296 : vector<8x128xf32>
    %cst_13 = arith.constant 0.000000e+00 : f32
    %298 = vector.broadcast %cst_13 : f32 to vector<8x128xf32>
    %299 = arith.maximumf %297, %298 : vector<8x128xf32>
    %300 = vector.broadcast %22 : f32 to vector<8x128xf32>
    %301 = arith.mulf %300, %197 : vector<8x128xf32>
    %302 = vector.broadcast %23 : f32 to vector<8x128xf32>
    %303 = arith.mulf %302, %200 : vector<8x128xf32>
    %304 = arith.addf %301, %303 : vector<8x128xf32>
    %305 = vector.broadcast %43 : f32 to vector<8x128xf32>
    %306 = arith.addf %304, %305 : vector<8x128xf32>
    %cst_14 = arith.constant 0.000000e+00 : f32
    %307 = vector.broadcast %cst_14 : f32 to vector<8x128xf32>
    %308 = arith.maximumf %306, %307 : vector<8x128xf32>
    %309 = vector.broadcast %24 : f32 to vector<8x128xf32>
    %310 = arith.mulf %309, %197 : vector<8x128xf32>
    %311 = vector.broadcast %25 : f32 to vector<8x128xf32>
    %312 = arith.mulf %311, %200 : vector<8x128xf32>
    %313 = arith.addf %310, %312 : vector<8x128xf32>
    %314 = vector.broadcast %44 : f32 to vector<8x128xf32>
    %315 = arith.addf %313, %314 : vector<8x128xf32>
    %cst_15 = arith.constant 0.000000e+00 : f32
    %316 = vector.broadcast %cst_15 : f32 to vector<8x128xf32>
    %317 = arith.maximumf %315, %316 : vector<8x128xf32>
    %318 = vector.broadcast %26 : f32 to vector<8x128xf32>
    %319 = arith.mulf %318, %197 : vector<8x128xf32>
    %320 = vector.broadcast %27 : f32 to vector<8x128xf32>
    %321 = arith.mulf %320, %200 : vector<8x128xf32>
    %322 = arith.addf %319, %321 : vector<8x128xf32>
    %323 = vector.broadcast %45 : f32 to vector<8x128xf32>
    %324 = arith.addf %322, %323 : vector<8x128xf32>
    %cst_16 = arith.constant 0.000000e+00 : f32
    %325 = vector.broadcast %cst_16 : f32 to vector<8x128xf32>
    %326 = arith.maximumf %324, %325 : vector<8x128xf32>
    %327 = vector.broadcast %28 : f32 to vector<8x128xf32>
    %328 = arith.mulf %327, %197 : vector<8x128xf32>
    %329 = vector.broadcast %29 : f32 to vector<8x128xf32>
    %330 = arith.mulf %329, %200 : vector<8x128xf32>
    %331 = arith.addf %328, %330 : vector<8x128xf32>
    %332 = vector.broadcast %46 : f32 to vector<8x128xf32>
    %333 = arith.addf %331, %332 : vector<8x128xf32>
    %cst_17 = arith.constant 0.000000e+00 : f32
    %334 = vector.broadcast %cst_17 : f32 to vector<8x128xf32>
    %335 = arith.maximumf %333, %334 : vector<8x128xf32>
    %336 = vector.broadcast %30 : f32 to vector<8x128xf32>
    %337 = arith.mulf %336, %197 : vector<8x128xf32>
    %338 = vector.broadcast %31 : f32 to vector<8x128xf32>
    %339 = arith.mulf %338, %200 : vector<8x128xf32>
    %340 = arith.addf %337, %339 : vector<8x128xf32>
    %341 = vector.broadcast %47 : f32 to vector<8x128xf32>
    %342 = arith.addf %340, %341 : vector<8x128xf32>
    %cst_18 = arith.constant 0.000000e+00 : f32
    %343 = vector.broadcast %cst_18 : f32 to vector<8x128xf32>
    %344 = arith.maximumf %342, %343 : vector<8x128xf32>
    %345 = vector.broadcast %48 : f32 to vector<8x128xf32>
    %346 = arith.mulf %345, %209 : vector<8x128xf32>
    %347 = vector.broadcast %49 : f32 to vector<8x128xf32>
    %348 = arith.mulf %347, %218 : vector<8x128xf32>
    %349 = arith.addf %346, %348 : vector<8x128xf32>
    %350 = vector.broadcast %50 : f32 to vector<8x128xf32>
    %351 = arith.mulf %350, %227 : vector<8x128xf32>
    %352 = arith.addf %349, %351 : vector<8x128xf32>
    %353 = vector.broadcast %51 : f32 to vector<8x128xf32>
    %354 = arith.mulf %353, %236 : vector<8x128xf32>
    %355 = arith.addf %352, %354 : vector<8x128xf32>
    %356 = vector.broadcast %52 : f32 to vector<8x128xf32>
    %357 = arith.mulf %356, %245 : vector<8x128xf32>
    %358 = vector.broadcast %53 : f32 to vector<8x128xf32>
    %359 = arith.mulf %358, %254 : vector<8x128xf32>
    %360 = arith.addf %357, %359 : vector<8x128xf32>
    %361 = vector.broadcast %54 : f32 to vector<8x128xf32>
    %362 = arith.mulf %361, %263 : vector<8x128xf32>
    %363 = arith.addf %360, %362 : vector<8x128xf32>
    %364 = vector.broadcast %55 : f32 to vector<8x128xf32>
    %365 = arith.mulf %364, %272 : vector<8x128xf32>
    %366 = arith.addf %363, %365 : vector<8x128xf32>
    %367 = vector.broadcast %56 : f32 to vector<8x128xf32>
    %368 = arith.mulf %367, %281 : vector<8x128xf32>
    %369 = vector.broadcast %57 : f32 to vector<8x128xf32>
    %370 = arith.mulf %369, %290 : vector<8x128xf32>
    %371 = arith.addf %368, %370 : vector<8x128xf32>
    %372 = vector.broadcast %58 : f32 to vector<8x128xf32>
    %373 = arith.mulf %372, %299 : vector<8x128xf32>
    %374 = arith.addf %371, %373 : vector<8x128xf32>
    %375 = vector.broadcast %59 : f32 to vector<8x128xf32>
    %376 = arith.mulf %375, %308 : vector<8x128xf32>
    %377 = arith.addf %374, %376 : vector<8x128xf32>
    %378 = vector.broadcast %60 : f32 to vector<8x128xf32>
    %379 = arith.mulf %378, %317 : vector<8x128xf32>
    %380 = vector.broadcast %61 : f32 to vector<8x128xf32>
    %381 = arith.mulf %380, %326 : vector<8x128xf32>
    %382 = arith.addf %379, %381 : vector<8x128xf32>
    %383 = vector.broadcast %62 : f32 to vector<8x128xf32>
    %384 = arith.mulf %383, %335 : vector<8x128xf32>
    %385 = arith.addf %382, %384 : vector<8x128xf32>
    %386 = vector.broadcast %63 : f32 to vector<8x128xf32>
    %387 = arith.mulf %386, %344 : vector<8x128xf32>
    %388 = arith.addf %385, %387 : vector<8x128xf32>
    %389 = arith.addf %355, %366 : vector<8x128xf32>
    %390 = arith.addf %389, %377 : vector<8x128xf32>
    %391 = arith.addf %390, %388 : vector<8x128xf32>
    %392 = vector.broadcast %176 : f32 to vector<8x128xf32>
    %393 = arith.addf %391, %392 : vector<8x128xf32>
    %cst_19 = arith.constant 0.000000e+00 : f32
    %394 = vector.broadcast %cst_19 : f32 to vector<8x128xf32>
    %395 = arith.maximumf %393, %394 : vector<8x128xf32>
    %396 = vector.broadcast %64 : f32 to vector<8x128xf32>
    %397 = arith.mulf %396, %209 : vector<8x128xf32>
    %398 = vector.broadcast %65 : f32 to vector<8x128xf32>
    %399 = arith.mulf %398, %218 : vector<8x128xf32>
    %400 = arith.addf %397, %399 : vector<8x128xf32>
    %401 = vector.broadcast %66 : f32 to vector<8x128xf32>
    %402 = arith.mulf %401, %227 : vector<8x128xf32>
    %403 = arith.addf %400, %402 : vector<8x128xf32>
    %404 = vector.broadcast %67 : f32 to vector<8x128xf32>
    %405 = arith.mulf %404, %236 : vector<8x128xf32>
    %406 = arith.addf %403, %405 : vector<8x128xf32>
    %407 = vector.broadcast %68 : f32 to vector<8x128xf32>
    %408 = arith.mulf %407, %245 : vector<8x128xf32>
    %409 = vector.broadcast %69 : f32 to vector<8x128xf32>
    %410 = arith.mulf %409, %254 : vector<8x128xf32>
    %411 = arith.addf %408, %410 : vector<8x128xf32>
    %412 = vector.broadcast %70 : f32 to vector<8x128xf32>
    %413 = arith.mulf %412, %263 : vector<8x128xf32>
    %414 = arith.addf %411, %413 : vector<8x128xf32>
    %415 = vector.broadcast %71 : f32 to vector<8x128xf32>
    %416 = arith.mulf %415, %272 : vector<8x128xf32>
    %417 = arith.addf %414, %416 : vector<8x128xf32>
    %418 = vector.broadcast %72 : f32 to vector<8x128xf32>
    %419 = arith.mulf %418, %281 : vector<8x128xf32>
    %420 = vector.broadcast %73 : f32 to vector<8x128xf32>
    %421 = arith.mulf %420, %290 : vector<8x128xf32>
    %422 = arith.addf %419, %421 : vector<8x128xf32>
    %423 = vector.broadcast %74 : f32 to vector<8x128xf32>
    %424 = arith.mulf %423, %299 : vector<8x128xf32>
    %425 = arith.addf %422, %424 : vector<8x128xf32>
    %426 = vector.broadcast %75 : f32 to vector<8x128xf32>
    %427 = arith.mulf %426, %308 : vector<8x128xf32>
    %428 = arith.addf %425, %427 : vector<8x128xf32>
    %429 = vector.broadcast %76 : f32 to vector<8x128xf32>
    %430 = arith.mulf %429, %317 : vector<8x128xf32>
    %431 = vector.broadcast %77 : f32 to vector<8x128xf32>
    %432 = arith.mulf %431, %326 : vector<8x128xf32>
    %433 = arith.addf %430, %432 : vector<8x128xf32>
    %434 = vector.broadcast %78 : f32 to vector<8x128xf32>
    %435 = arith.mulf %434, %335 : vector<8x128xf32>
    %436 = arith.addf %433, %435 : vector<8x128xf32>
    %437 = vector.broadcast %79 : f32 to vector<8x128xf32>
    %438 = arith.mulf %437, %344 : vector<8x128xf32>
    %439 = arith.addf %436, %438 : vector<8x128xf32>
    %440 = arith.addf %406, %417 : vector<8x128xf32>
    %441 = arith.addf %440, %428 : vector<8x128xf32>
    %442 = arith.addf %441, %439 : vector<8x128xf32>
    %443 = vector.broadcast %177 : f32 to vector<8x128xf32>
    %444 = arith.addf %442, %443 : vector<8x128xf32>
    %cst_20 = arith.constant 0.000000e+00 : f32
    %445 = vector.broadcast %cst_20 : f32 to vector<8x128xf32>
    %446 = arith.maximumf %444, %445 : vector<8x128xf32>
    %447 = vector.broadcast %80 : f32 to vector<8x128xf32>
    %448 = arith.mulf %447, %209 : vector<8x128xf32>
    %449 = vector.broadcast %81 : f32 to vector<8x128xf32>
    %450 = arith.mulf %449, %218 : vector<8x128xf32>
    %451 = arith.addf %448, %450 : vector<8x128xf32>
    %452 = vector.broadcast %82 : f32 to vector<8x128xf32>
    %453 = arith.mulf %452, %227 : vector<8x128xf32>
    %454 = arith.addf %451, %453 : vector<8x128xf32>
    %455 = vector.broadcast %83 : f32 to vector<8x128xf32>
    %456 = arith.mulf %455, %236 : vector<8x128xf32>
    %457 = arith.addf %454, %456 : vector<8x128xf32>
    %458 = vector.broadcast %84 : f32 to vector<8x128xf32>
    %459 = arith.mulf %458, %245 : vector<8x128xf32>
    %460 = vector.broadcast %85 : f32 to vector<8x128xf32>
    %461 = arith.mulf %460, %254 : vector<8x128xf32>
    %462 = arith.addf %459, %461 : vector<8x128xf32>
    %463 = vector.broadcast %86 : f32 to vector<8x128xf32>
    %464 = arith.mulf %463, %263 : vector<8x128xf32>
    %465 = arith.addf %462, %464 : vector<8x128xf32>
    %466 = vector.broadcast %87 : f32 to vector<8x128xf32>
    %467 = arith.mulf %466, %272 : vector<8x128xf32>
    %468 = arith.addf %465, %467 : vector<8x128xf32>
    %469 = vector.broadcast %88 : f32 to vector<8x128xf32>
    %470 = arith.mulf %469, %281 : vector<8x128xf32>
    %471 = vector.broadcast %89 : f32 to vector<8x128xf32>
    %472 = arith.mulf %471, %290 : vector<8x128xf32>
    %473 = arith.addf %470, %472 : vector<8x128xf32>
    %474 = vector.broadcast %90 : f32 to vector<8x128xf32>
    %475 = arith.mulf %474, %299 : vector<8x128xf32>
    %476 = arith.addf %473, %475 : vector<8x128xf32>
    %477 = vector.broadcast %91 : f32 to vector<8x128xf32>
    %478 = arith.mulf %477, %308 : vector<8x128xf32>
    %479 = arith.addf %476, %478 : vector<8x128xf32>
    %480 = vector.broadcast %92 : f32 to vector<8x128xf32>
    %481 = arith.mulf %480, %317 : vector<8x128xf32>
    %482 = vector.broadcast %93 : f32 to vector<8x128xf32>
    %483 = arith.mulf %482, %326 : vector<8x128xf32>
    %484 = arith.addf %481, %483 : vector<8x128xf32>
    %485 = vector.broadcast %94 : f32 to vector<8x128xf32>
    %486 = arith.mulf %485, %335 : vector<8x128xf32>
    %487 = arith.addf %484, %486 : vector<8x128xf32>
    %488 = vector.broadcast %95 : f32 to vector<8x128xf32>
    %489 = arith.mulf %488, %344 : vector<8x128xf32>
    %490 = arith.addf %487, %489 : vector<8x128xf32>
    %491 = arith.addf %457, %468 : vector<8x128xf32>
    %492 = arith.addf %491, %479 : vector<8x128xf32>
    %493 = arith.addf %492, %490 : vector<8x128xf32>
    %494 = vector.broadcast %178 : f32 to vector<8x128xf32>
    %495 = arith.addf %493, %494 : vector<8x128xf32>
    %cst_21 = arith.constant 0.000000e+00 : f32
    %496 = vector.broadcast %cst_21 : f32 to vector<8x128xf32>
    %497 = arith.maximumf %495, %496 : vector<8x128xf32>
    %498 = vector.broadcast %96 : f32 to vector<8x128xf32>
    %499 = arith.mulf %498, %209 : vector<8x128xf32>
    %500 = vector.broadcast %97 : f32 to vector<8x128xf32>
    %501 = arith.mulf %500, %218 : vector<8x128xf32>
    %502 = arith.addf %499, %501 : vector<8x128xf32>
    %503 = vector.broadcast %98 : f32 to vector<8x128xf32>
    %504 = arith.mulf %503, %227 : vector<8x128xf32>
    %505 = arith.addf %502, %504 : vector<8x128xf32>
    %506 = vector.broadcast %99 : f32 to vector<8x128xf32>
    %507 = arith.mulf %506, %236 : vector<8x128xf32>
    %508 = arith.addf %505, %507 : vector<8x128xf32>
    %509 = vector.broadcast %100 : f32 to vector<8x128xf32>
    %510 = arith.mulf %509, %245 : vector<8x128xf32>
    %511 = vector.broadcast %101 : f32 to vector<8x128xf32>
    %512 = arith.mulf %511, %254 : vector<8x128xf32>
    %513 = arith.addf %510, %512 : vector<8x128xf32>
    %514 = vector.broadcast %102 : f32 to vector<8x128xf32>
    %515 = arith.mulf %514, %263 : vector<8x128xf32>
    %516 = arith.addf %513, %515 : vector<8x128xf32>
    %517 = vector.broadcast %103 : f32 to vector<8x128xf32>
    %518 = arith.mulf %517, %272 : vector<8x128xf32>
    %519 = arith.addf %516, %518 : vector<8x128xf32>
    %520 = vector.broadcast %104 : f32 to vector<8x128xf32>
    %521 = arith.mulf %520, %281 : vector<8x128xf32>
    %522 = vector.broadcast %105 : f32 to vector<8x128xf32>
    %523 = arith.mulf %522, %290 : vector<8x128xf32>
    %524 = arith.addf %521, %523 : vector<8x128xf32>
    %525 = vector.broadcast %106 : f32 to vector<8x128xf32>
    %526 = arith.mulf %525, %299 : vector<8x128xf32>
    %527 = arith.addf %524, %526 : vector<8x128xf32>
    %528 = vector.broadcast %107 : f32 to vector<8x128xf32>
    %529 = arith.mulf %528, %308 : vector<8x128xf32>
    %530 = arith.addf %527, %529 : vector<8x128xf32>
    %531 = vector.broadcast %108 : f32 to vector<8x128xf32>
    %532 = arith.mulf %531, %317 : vector<8x128xf32>
    %533 = vector.broadcast %109 : f32 to vector<8x128xf32>
    %534 = arith.mulf %533, %326 : vector<8x128xf32>
    %535 = arith.addf %532, %534 : vector<8x128xf32>
    %536 = vector.broadcast %110 : f32 to vector<8x128xf32>
    %537 = arith.mulf %536, %335 : vector<8x128xf32>
    %538 = arith.addf %535, %537 : vector<8x128xf32>
    %539 = vector.broadcast %111 : f32 to vector<8x128xf32>
    %540 = arith.mulf %539, %344 : vector<8x128xf32>
    %541 = arith.addf %538, %540 : vector<8x128xf32>
    %542 = arith.addf %508, %519 : vector<8x128xf32>
    %543 = arith.addf %542, %530 : vector<8x128xf32>
    %544 = arith.addf %543, %541 : vector<8x128xf32>
    %545 = vector.broadcast %179 : f32 to vector<8x128xf32>
    %546 = arith.addf %544, %545 : vector<8x128xf32>
    %cst_22 = arith.constant 0.000000e+00 : f32
    %547 = vector.broadcast %cst_22 : f32 to vector<8x128xf32>
    %548 = arith.maximumf %546, %547 : vector<8x128xf32>
    %549 = vector.broadcast %112 : f32 to vector<8x128xf32>
    %550 = arith.mulf %549, %209 : vector<8x128xf32>
    %551 = vector.broadcast %113 : f32 to vector<8x128xf32>
    %552 = arith.mulf %551, %218 : vector<8x128xf32>
    %553 = arith.addf %550, %552 : vector<8x128xf32>
    %554 = vector.broadcast %114 : f32 to vector<8x128xf32>
    %555 = arith.mulf %554, %227 : vector<8x128xf32>
    %556 = arith.addf %553, %555 : vector<8x128xf32>
    %557 = vector.broadcast %115 : f32 to vector<8x128xf32>
    %558 = arith.mulf %557, %236 : vector<8x128xf32>
    %559 = arith.addf %556, %558 : vector<8x128xf32>
    %560 = vector.broadcast %116 : f32 to vector<8x128xf32>
    %561 = arith.mulf %560, %245 : vector<8x128xf32>
    %562 = vector.broadcast %117 : f32 to vector<8x128xf32>
    %563 = arith.mulf %562, %254 : vector<8x128xf32>
    %564 = arith.addf %561, %563 : vector<8x128xf32>
    %565 = vector.broadcast %118 : f32 to vector<8x128xf32>
    %566 = arith.mulf %565, %263 : vector<8x128xf32>
    %567 = arith.addf %564, %566 : vector<8x128xf32>
    %568 = vector.broadcast %119 : f32 to vector<8x128xf32>
    %569 = arith.mulf %568, %272 : vector<8x128xf32>
    %570 = arith.addf %567, %569 : vector<8x128xf32>
    %571 = vector.broadcast %120 : f32 to vector<8x128xf32>
    %572 = arith.mulf %571, %281 : vector<8x128xf32>
    %573 = vector.broadcast %121 : f32 to vector<8x128xf32>
    %574 = arith.mulf %573, %290 : vector<8x128xf32>
    %575 = arith.addf %572, %574 : vector<8x128xf32>
    %576 = vector.broadcast %122 : f32 to vector<8x128xf32>
    %577 = arith.mulf %576, %299 : vector<8x128xf32>
    %578 = arith.addf %575, %577 : vector<8x128xf32>
    %579 = vector.broadcast %123 : f32 to vector<8x128xf32>
    %580 = arith.mulf %579, %308 : vector<8x128xf32>
    %581 = arith.addf %578, %580 : vector<8x128xf32>
    %582 = vector.broadcast %124 : f32 to vector<8x128xf32>
    %583 = arith.mulf %582, %317 : vector<8x128xf32>
    %584 = vector.broadcast %125 : f32 to vector<8x128xf32>
    %585 = arith.mulf %584, %326 : vector<8x128xf32>
    %586 = arith.addf %583, %585 : vector<8x128xf32>
    %587 = vector.broadcast %126 : f32 to vector<8x128xf32>
    %588 = arith.mulf %587, %335 : vector<8x128xf32>
    %589 = arith.addf %586, %588 : vector<8x128xf32>
    %590 = vector.broadcast %127 : f32 to vector<8x128xf32>
    %591 = arith.mulf %590, %344 : vector<8x128xf32>
    %592 = arith.addf %589, %591 : vector<8x128xf32>
    %593 = arith.addf %559, %570 : vector<8x128xf32>
    %594 = arith.addf %593, %581 : vector<8x128xf32>
    %595 = arith.addf %594, %592 : vector<8x128xf32>
    %596 = vector.broadcast %180 : f32 to vector<8x128xf32>
    %597 = arith.addf %595, %596 : vector<8x128xf32>
    %cst_23 = arith.constant 0.000000e+00 : f32
    %598 = vector.broadcast %cst_23 : f32 to vector<8x128xf32>
    %599 = arith.maximumf %597, %598 : vector<8x128xf32>
    %600 = vector.broadcast %128 : f32 to vector<8x128xf32>
    %601 = arith.mulf %600, %209 : vector<8x128xf32>
    %602 = vector.broadcast %129 : f32 to vector<8x128xf32>
    %603 = arith.mulf %602, %218 : vector<8x128xf32>
    %604 = arith.addf %601, %603 : vector<8x128xf32>
    %605 = vector.broadcast %130 : f32 to vector<8x128xf32>
    %606 = arith.mulf %605, %227 : vector<8x128xf32>
    %607 = arith.addf %604, %606 : vector<8x128xf32>
    %608 = vector.broadcast %131 : f32 to vector<8x128xf32>
    %609 = arith.mulf %608, %236 : vector<8x128xf32>
    %610 = arith.addf %607, %609 : vector<8x128xf32>
    %611 = vector.broadcast %132 : f32 to vector<8x128xf32>
    %612 = arith.mulf %611, %245 : vector<8x128xf32>
    %613 = vector.broadcast %133 : f32 to vector<8x128xf32>
    %614 = arith.mulf %613, %254 : vector<8x128xf32>
    %615 = arith.addf %612, %614 : vector<8x128xf32>
    %616 = vector.broadcast %134 : f32 to vector<8x128xf32>
    %617 = arith.mulf %616, %263 : vector<8x128xf32>
    %618 = arith.addf %615, %617 : vector<8x128xf32>
    %619 = vector.broadcast %135 : f32 to vector<8x128xf32>
    %620 = arith.mulf %619, %272 : vector<8x128xf32>
    %621 = arith.addf %618, %620 : vector<8x128xf32>
    %622 = vector.broadcast %136 : f32 to vector<8x128xf32>
    %623 = arith.mulf %622, %281 : vector<8x128xf32>
    %624 = vector.broadcast %137 : f32 to vector<8x128xf32>
    %625 = arith.mulf %624, %290 : vector<8x128xf32>
    %626 = arith.addf %623, %625 : vector<8x128xf32>
    %627 = vector.broadcast %138 : f32 to vector<8x128xf32>
    %628 = arith.mulf %627, %299 : vector<8x128xf32>
    %629 = arith.addf %626, %628 : vector<8x128xf32>
    %630 = vector.broadcast %139 : f32 to vector<8x128xf32>
    %631 = arith.mulf %630, %308 : vector<8x128xf32>
    %632 = arith.addf %629, %631 : vector<8x128xf32>
    %633 = vector.broadcast %140 : f32 to vector<8x128xf32>
    %634 = arith.mulf %633, %317 : vector<8x128xf32>
    %635 = vector.broadcast %141 : f32 to vector<8x128xf32>
    %636 = arith.mulf %635, %326 : vector<8x128xf32>
    %637 = arith.addf %634, %636 : vector<8x128xf32>
    %638 = vector.broadcast %142 : f32 to vector<8x128xf32>
    %639 = arith.mulf %638, %335 : vector<8x128xf32>
    %640 = arith.addf %637, %639 : vector<8x128xf32>
    %641 = vector.broadcast %143 : f32 to vector<8x128xf32>
    %642 = arith.mulf %641, %344 : vector<8x128xf32>
    %643 = arith.addf %640, %642 : vector<8x128xf32>
    %644 = arith.addf %610, %621 : vector<8x128xf32>
    %645 = arith.addf %644, %632 : vector<8x128xf32>
    %646 = arith.addf %645, %643 : vector<8x128xf32>
    %647 = vector.broadcast %181 : f32 to vector<8x128xf32>
    %648 = arith.addf %646, %647 : vector<8x128xf32>
    %cst_24 = arith.constant 0.000000e+00 : f32
    %649 = vector.broadcast %cst_24 : f32 to vector<8x128xf32>
    %650 = arith.maximumf %648, %649 : vector<8x128xf32>
    %651 = vector.broadcast %144 : f32 to vector<8x128xf32>
    %652 = arith.mulf %651, %209 : vector<8x128xf32>
    %653 = vector.broadcast %145 : f32 to vector<8x128xf32>
    %654 = arith.mulf %653, %218 : vector<8x128xf32>
    %655 = arith.addf %652, %654 : vector<8x128xf32>
    %656 = vector.broadcast %146 : f32 to vector<8x128xf32>
    %657 = arith.mulf %656, %227 : vector<8x128xf32>
    %658 = arith.addf %655, %657 : vector<8x128xf32>
    %659 = vector.broadcast %147 : f32 to vector<8x128xf32>
    %660 = arith.mulf %659, %236 : vector<8x128xf32>
    %661 = arith.addf %658, %660 : vector<8x128xf32>
    %662 = vector.broadcast %148 : f32 to vector<8x128xf32>
    %663 = arith.mulf %662, %245 : vector<8x128xf32>
    %664 = vector.broadcast %149 : f32 to vector<8x128xf32>
    %665 = arith.mulf %664, %254 : vector<8x128xf32>
    %666 = arith.addf %663, %665 : vector<8x128xf32>
    %667 = vector.broadcast %150 : f32 to vector<8x128xf32>
    %668 = arith.mulf %667, %263 : vector<8x128xf32>
    %669 = arith.addf %666, %668 : vector<8x128xf32>
    %670 = vector.broadcast %151 : f32 to vector<8x128xf32>
    %671 = arith.mulf %670, %272 : vector<8x128xf32>
    %672 = arith.addf %669, %671 : vector<8x128xf32>
    %673 = vector.broadcast %152 : f32 to vector<8x128xf32>
    %674 = arith.mulf %673, %281 : vector<8x128xf32>
    %675 = vector.broadcast %153 : f32 to vector<8x128xf32>
    %676 = arith.mulf %675, %290 : vector<8x128xf32>
    %677 = arith.addf %674, %676 : vector<8x128xf32>
    %678 = vector.broadcast %154 : f32 to vector<8x128xf32>
    %679 = arith.mulf %678, %299 : vector<8x128xf32>
    %680 = arith.addf %677, %679 : vector<8x128xf32>
    %681 = vector.broadcast %155 : f32 to vector<8x128xf32>
    %682 = arith.mulf %681, %308 : vector<8x128xf32>
    %683 = arith.addf %680, %682 : vector<8x128xf32>
    %684 = vector.broadcast %156 : f32 to vector<8x128xf32>
    %685 = arith.mulf %684, %317 : vector<8x128xf32>
    %686 = vector.broadcast %157 : f32 to vector<8x128xf32>
    %687 = arith.mulf %686, %326 : vector<8x128xf32>
    %688 = arith.addf %685, %687 : vector<8x128xf32>
    %689 = vector.broadcast %158 : f32 to vector<8x128xf32>
    %690 = arith.mulf %689, %335 : vector<8x128xf32>
    %691 = arith.addf %688, %690 : vector<8x128xf32>
    %692 = vector.broadcast %159 : f32 to vector<8x128xf32>
    %693 = arith.mulf %692, %344 : vector<8x128xf32>
    %694 = arith.addf %691, %693 : vector<8x128xf32>
    %695 = arith.addf %661, %672 : vector<8x128xf32>
    %696 = arith.addf %695, %683 : vector<8x128xf32>
    %697 = arith.addf %696, %694 : vector<8x128xf32>
    %698 = vector.broadcast %182 : f32 to vector<8x128xf32>
    %699 = arith.addf %697, %698 : vector<8x128xf32>
    %cst_25 = arith.constant 0.000000e+00 : f32
    %700 = vector.broadcast %cst_25 : f32 to vector<8x128xf32>
    %701 = arith.maximumf %699, %700 : vector<8x128xf32>
    %702 = vector.broadcast %160 : f32 to vector<8x128xf32>
    %703 = arith.mulf %702, %209 : vector<8x128xf32>
    %704 = vector.broadcast %161 : f32 to vector<8x128xf32>
    %705 = arith.mulf %704, %218 : vector<8x128xf32>
    %706 = arith.addf %703, %705 : vector<8x128xf32>
    %707 = vector.broadcast %162 : f32 to vector<8x128xf32>
    %708 = arith.mulf %707, %227 : vector<8x128xf32>
    %709 = arith.addf %706, %708 : vector<8x128xf32>
    %710 = vector.broadcast %163 : f32 to vector<8x128xf32>
    %711 = arith.mulf %710, %236 : vector<8x128xf32>
    %712 = arith.addf %709, %711 : vector<8x128xf32>
    %713 = vector.broadcast %164 : f32 to vector<8x128xf32>
    %714 = arith.mulf %713, %245 : vector<8x128xf32>
    %715 = vector.broadcast %165 : f32 to vector<8x128xf32>
    %716 = arith.mulf %715, %254 : vector<8x128xf32>
    %717 = arith.addf %714, %716 : vector<8x128xf32>
    %718 = vector.broadcast %166 : f32 to vector<8x128xf32>
    %719 = arith.mulf %718, %263 : vector<8x128xf32>
    %720 = arith.addf %717, %719 : vector<8x128xf32>
    %721 = vector.broadcast %167 : f32 to vector<8x128xf32>
    %722 = arith.mulf %721, %272 : vector<8x128xf32>
    %723 = arith.addf %720, %722 : vector<8x128xf32>
    %724 = vector.broadcast %168 : f32 to vector<8x128xf32>
    %725 = arith.mulf %724, %281 : vector<8x128xf32>
    %726 = vector.broadcast %169 : f32 to vector<8x128xf32>
    %727 = arith.mulf %726, %290 : vector<8x128xf32>
    %728 = arith.addf %725, %727 : vector<8x128xf32>
    %729 = vector.broadcast %170 : f32 to vector<8x128xf32>
    %730 = arith.mulf %729, %299 : vector<8x128xf32>
    %731 = arith.addf %728, %730 : vector<8x128xf32>
    %732 = vector.broadcast %171 : f32 to vector<8x128xf32>
    %733 = arith.mulf %732, %308 : vector<8x128xf32>
    %734 = arith.addf %731, %733 : vector<8x128xf32>
    %735 = vector.broadcast %172 : f32 to vector<8x128xf32>
    %736 = arith.mulf %735, %317 : vector<8x128xf32>
    %737 = vector.broadcast %173 : f32 to vector<8x128xf32>
    %738 = arith.mulf %737, %326 : vector<8x128xf32>
    %739 = arith.addf %736, %738 : vector<8x128xf32>
    %740 = vector.broadcast %174 : f32 to vector<8x128xf32>
    %741 = arith.mulf %740, %335 : vector<8x128xf32>
    %742 = arith.addf %739, %741 : vector<8x128xf32>
    %743 = vector.broadcast %175 : f32 to vector<8x128xf32>
    %744 = arith.mulf %743, %344 : vector<8x128xf32>
    %745 = arith.addf %742, %744 : vector<8x128xf32>
    %746 = arith.addf %712, %723 : vector<8x128xf32>
    %747 = arith.addf %746, %734 : vector<8x128xf32>
    %748 = arith.addf %747, %745 : vector<8x128xf32>
    %749 = vector.broadcast %183 : f32 to vector<8x128xf32>
    %750 = arith.addf %748, %749 : vector<8x128xf32>
    %cst_26 = arith.constant 0.000000e+00 : f32
    %751 = vector.broadcast %cst_26 : f32 to vector<8x128xf32>
    %752 = arith.maximumf %750, %751 : vector<8x128xf32>
    %753 = vector.broadcast %184 : f32 to vector<8x128xf32>
    %754 = arith.mulf %753, %395 : vector<8x128xf32>
    %755 = vector.broadcast %185 : f32 to vector<8x128xf32>
    %756 = arith.mulf %755, %446 : vector<8x128xf32>
    %757 = arith.addf %754, %756 : vector<8x128xf32>
    %758 = vector.broadcast %186 : f32 to vector<8x128xf32>
    %759 = arith.mulf %758, %497 : vector<8x128xf32>
    %760 = arith.addf %757, %759 : vector<8x128xf32>
    %761 = vector.broadcast %187 : f32 to vector<8x128xf32>
    %762 = arith.mulf %761, %548 : vector<8x128xf32>
    %763 = arith.addf %760, %762 : vector<8x128xf32>
    %764 = vector.broadcast %188 : f32 to vector<8x128xf32>
    %765 = arith.mulf %764, %599 : vector<8x128xf32>
    %766 = vector.broadcast %189 : f32 to vector<8x128xf32>
    %767 = arith.mulf %766, %650 : vector<8x128xf32>
    %768 = arith.addf %765, %767 : vector<8x128xf32>
    %769 = vector.broadcast %190 : f32 to vector<8x128xf32>
    %770 = arith.mulf %769, %701 : vector<8x128xf32>
    %771 = arith.addf %768, %770 : vector<8x128xf32>
    %772 = vector.broadcast %191 : f32 to vector<8x128xf32>
    %773 = arith.mulf %772, %752 : vector<8x128xf32>
    %774 = arith.addf %771, %773 : vector<8x128xf32>
    %775 = arith.addf %763, %774 : vector<8x128xf32>
    %776 = vector.broadcast %192 : f32 to vector<8x128xf32>
    %777 = arith.addf %775, %776 : vector<8x128xf32>
    %778 = arith.negf %777 : vector<8x128xf32>
    %779 = math.exp %778 : vector<8x128xf32>
    %cst_27 = arith.constant 1.000000e+00 : f32
    %780 = vector.broadcast %cst_27 : f32 to vector<8x128xf32>
    %781 = arith.addf %780, %779 : vector<8x128xf32>
    %782 = arith.divf %780, %781 : vector<8x128xf32>
    %783 = arith.index_cast %194 : i32 to index
    %c0_28 = arith.constant 0 : index
    %784 = vector.load %arg3[%783, %c0_28] : memref<8x128xf32, #tpu.memory_space<vmem>>, vector<8x128xf32>
    tpu.vector_store %arg3[%783, %c0_28], %782 {strides = array<i32>} : memref<8x128xf32, #tpu.memory_space<vmem>>, vector<8x128xf32>,
    %c1_i32 = arith.constant 1 : i32
    return
  }
  func.func @transform_0(%arg0: i32) -> i32 {
    %c0_i32 = arith.constant 0 : i32
    %c0_i32_0 = arith.constant 0 : i32
    return %c0_i32 : i32
  }
  func.func @transform_1(%arg0: i32) -> (i32, i32, i32) {
    %c0_i32 = arith.constant 0 : i32
    %c0_i32_0 = arith.constant 0 : i32
    %c0_i32_1 = arith.constant 0 : i32
    return %c0_i32, %arg0, %c0_i32_0 : i32, i32, i32
  }
  func.func @transform_2(%arg0: i32) -> (i32, i32) {
    %c0_i32 = arith.constant 0 : i32
    %c0_i32_0 = arith.constant 0 : i32
    return %arg0, %c0_i32 : i32, i32
  }
}

</mosaic_0001>

<bundles_post_ra>
// kernel: indoor_outdoor_forward.1
= control target key start
LH: loop header
LB: loop body
LE: loop exit
PB: predicated region body
PF: predicated region fallthrough
CT: control target
= control target key end

     0   :  { %7 = vsyncpa [#allocation3], 0  ;;  %s1829_s0 = inlined_call_operand.vmem [shape: f32[193], index: 0, kind: input, shape index: {}]   ;;  %s1830_s1 = inlined_call_operand.vmem [shape: f32[2,8,128], index: 1, kind: input, shape index: {}]   ;;  %s1831_s2 = inlined_call_operand.vmem [shape: f32[8,128], index: 2, kind: output, shape index: {}]  }
   0x1   :  { %s14_s11 = sshll.u32 %s1829_s0, 4  ;;  %s15_s11 = int_to_ptr.vmem [resolvable:$true] %s14_s11 }
   0x2   :  { %s986_s12 = scalar_lea.vmem %s15_s11, 32  ;;  %p991_p1 = scmp.lt.s32.totalorder %s15_s11, %s15_s11 }
   0x3   :  { %p987_p0 = scmp.ne.s32.totalorder %s15_s11, %s986_s12  ;;  %p992_p2 = scmp.lt.s32.totalorder %s986_s12, %s986_s12 }
   0x5   :  { %p993_p3 = por %p992_p2, %p991_p1 }
   0x7   :  { %p994_p4 = pnand %p993_p3, %p987_p0 }
   0x9   :  { %997 = shalt.err (!%p994_p4)
}
   0xa   :  { %s1000_s13 = smov [#allocation2]  }
   0xb   :  { %17 = dma.vmem_to_smem %s15_s11, 32, %s1000_s13, [#allocation3]  }
   0xc   :  { %998 = dma.done.wait [#allocation3], 32  }
   0xd   :  { %999 = vsyncadd [#allocation3], 4294967264 }
   0xe   :  { %23 = sfence }
   0xf   :  { %s24_s14 = sld [smem:[#allocation2]]  ;;  %s787_s15 = sld [smem:[#allocation2 + $0x1]]  ;;  %v1030_v0 = vld [vmem:[%s1830_s1] sm:$0xff]  ;;  %v1035_v1 = vld [vmem:[%s1830_s1 + $0x8] sm:$0xff] }
  0x10   :  { %s788_s16 = sld [smem:[#allocation2 + $0x2]]  ;;  %s789_s17 = sld [smem:[#allocation2 + $0x3]] }
  0x11   :  { %s790_s18 = sld [smem:[#allocation2 + $0x4]]  ;;  %s791_s19 = sld [smem:[#allocation2 + $0x5]] }
  0x12   :  { %s1019_s0 = sld [smem:[#allocation2 + $0x6]]  ;;  %s1021_s20 = sld [smem:[#allocation2 + $0x7]] }
  0x13   :  { %s1023_s21 = sld [smem:[#allocation2 + $0x8]]  ;;  %s1025_s22 = sld [smem:[#allocation2 + $0x9]] }
  0x14   :  { %s1037_s27 = sld [smem:[#allocation2 + $0xa]]  ;;  %s1039_s28 = sld [smem:[#allocation2 + $0xb]] }
  0x15   :  { %s1041_s29 = sld [smem:[#allocation2 + $0xc]]  ;;  %s1043_s30 = sld [smem:[#allocation2 + $0xd]]  ;;  %v221_v2 = vstv %s24_s14  ;;  %v223_v3 = vstv %s787_s15 }
  0x16   :  { %s1045_s3 = sld [smem:[#allocation2 + $0xe]]  ;;  %s1047_s4 = sld [smem:[#allocation2 + $0xf]]  ;;  %v222_v4 = vmul.f32 %v221_v2, %v1030_v0  ;;  %v224_v5 = vmul.f32 %v1035_v1, %v223_v3  ;;  %v229_v6 = vstv %s788_s16  ;;  %v231_v7 = vstv %s789_s17 }
  0x17   :  { %s1051_s1 = sld [smem:[#allocation2 + $0x10]]  ;;  %s1053_s5 = sld [smem:[#allocation2 + $0x11]]  ;;  %v230_v8 = vmul.f32 %v229_v6, %v1030_v0  ;;  %v232_v9 = vmul.f32 %v1035_v1, %v231_v7  ;;  %v237_v10 = vstv %s790_s18  ;;  %v239_v11 = vstv %s791_s19 }
  0x18   :  { %s1057_s6 = sld [smem:[#allocation2 + $0x12]]  ;;  %s1059_s7 = sld [smem:[#allocation2 + $0x13]]  ;;  %v1061_v12 = vadd.f32 %v224_v5, %v222_v4  ;;  %v238_v13 = vmul.f32 %v237_v10, %v1030_v0  ;;  %v240_v14 = vmul.f32 %v1035_v1, %v239_v11  ;;  %v245_v15 = vstv %s1019_s0 }
  0x19   :  { %s1066_s8 = sld [smem:[#allocation2 + $0x14]]  ;;  %s1068_s9 = sld [smem:[#allocation2 + $0x15]]  ;;  %v1070_v16 = vadd.f32 %v232_v9, %v230_v8  ;;  %v246_v17 = vmul.f32 %v245_v15, %v1030_v0  ;;  %v247_v18 = vstv %s1021_s20  ;;  %v253_v19 = vstv %s1023_s21 }
  0x1a   :  { %s1075_s10 = sld [smem:[#allocation2 + $0x16]]  ;;  %v1077_v20 = vadd.f32 %v240_v14, %v238_v13  ;;  %v248_v21 = vmul.f32 %v1035_v1, %v247_v18  ;;  %v254_v22 = vmul.f32 %v253_v19, %v1030_v0  ;;  %v255_v23 = vstv %s1025_s22  ;;  %s1082_s11 = sld [smem:[#allocation2 + $0x17]] }
  0x1b   :  { %s1084_s12 = sld [smem:[#allocation2 + $0x18]]  ;;  %v256_v24 = vmul.f32 %v1035_v1, %v255_v23  ;;  %v261_v25 = vstv %s1037_s27  ;;  %v263_v26 = vstv %s1039_s28  ;;  %v269_v27 = vstv %s1041_s29  ;;  %s1090_s13 = sld [smem:[#allocation2 + $0x19]] }
  0x1c   :  { %v249_v28 = vadd.f32 %v248_v21, %v246_v17  ;;  %v262_v29 = vmul.f32 %v261_v25, %v1030_v0  ;;  %v264_v30 = vmul.f32 %v1035_v1, %v263_v26  ;;  %v270_v31 = vmul.f32 %v269_v27, %v1030_v0  ;;  %s1095_s14 = sld [smem:[#allocation2 + $0x1a]]  ;;  %s1105_s15 = sld [smem:[#allocation2 + $0x20]] }
  0x1d   :  { %v1097_v32 = vadd.f32 %v256_v24, %v254_v22  ;;  %v271_v33 = vstv %s1043_s30  ;;  %v277_v34 = vstv %s1045_s3  ;;  %v279_v35 = vstv %s1047_s4  ;;  %s1107_s16 = sld [smem:[#allocation2 + $0x21]]  ;;  %s1113_s17 = sld [smem:[#allocation2 + $0x22]] }
  0x1e   :  { %v265_v36 = vadd.f32 %v264_v30, %v262_v29  ;;  %v272_v37 = vmul.f32 %v1035_v1, %v271_v33  ;;  %v278_v38 = vmul.f32 %v277_v34, %v1030_v0  ;;  %v280_v39 = vmul.f32 %v1035_v1, %v279_v35  ;;  %s1115_s18 = sld [smem:[#allocation2 + $0x23]]  ;;  %s1119_s19 = sld [smem:[#allocation2 + $0x24]] }
  0x1f   :  { %v285_v40 = vstv %s1051_s1  ;;  %v287_v41 = vstv %s1053_s5  ;;  %v293_v42 = vstv %s1057_s6  ;;  %v295_v43 = vstv %s1059_s7  ;;  %s1121_s0 = sld [smem:[#allocation2 + $0x25]]  ;;  %s1127_s20 = sld [smem:[#allocation2 + $0x26]] }
  0x20   :  { %v273_v44 = vadd.f32 %v272_v37, %v270_v31  ;;  %v281_v45 = vadd.f32 %v280_v39, %v278_v38  ;;  %v286_v46 = vmul.f32 %v285_v40, %v1030_v0  ;;  %v288_v47 = vmul.f32 %v1035_v1, %v287_v41  ;;  %s1129_s21 = sld [smem:[#allocation2 + $0x27]]  ;;  %s1134_s22 = sld [smem:[#allocation2 + $0x28]] }
  0x21   :  { %v294_v48 = vmul.f32 %v293_v42, %v1030_v0  ;;  %v296_v49 = vmul.f32 %v1035_v1, %v295_v43  ;;  %v301_v50 = vstv %s1066_s8  ;;  %v303_v51 = vstv %s1068_s9  ;;  %s1136_s23 = sld [smem:[#allocation2 + $0x29]]  ;;  %s1141_s24 = sld [smem:[#allocation2 + $0x2a]] }
  0x22   :  { %v289_v52 = vadd.f32 %v288_v47, %v286_v46  ;;  %v302_v53 = vmul.f32 %v301_v50, %v1030_v0  ;;  %v304_v54 = vmul.f32 %v1035_v1, %v303_v51  ;;  %v309_v55 = vstv %s1075_s10  ;;  %s1146_s25 = sld [smem:[#allocation2 + $0x2b]]  ;;  %s1148_s26 = sld [smem:[#allocation2 + $0x2c]] }
  0x23   :  { %v297_v56 = vadd.f32 %v296_v49, %v294_v48  ;;  %v310_v57 = vmul.f32 %v309_v55, %v1030_v0  ;;  %v311_v58 = vstv %s1082_s11  ;;  %v317_v59 = vstv %s1084_s12  ;;  %s1158_s27 = sld [smem:[#allocation2 + $0x1b]]  ;;  %s1160_s28 = sld [smem:[#allocation2 + $0x2d]] }
  0x24   :  { %v305_v60 = vadd.f32 %v304_v54, %v302_v53  ;;  %v312_v61 = vmul.f32 %v1035_v1, %v311_v58  ;;  %v318_v62 = vmul.f32 %v317_v59, %v1030_v0  ;;  %v319_v63 = vstv %s1090_s13  ;;  %s1165_s29 = sld [smem:[#allocation2 + $0x1c]]  ;;  %s1167_s30 = sld [smem:[#allocation2 + $0x1d]] }
  0x25   :  { %v226_v2 = vstv %s1105_s15  ;;  %v234_v3 = vstv %s1107_s16  ;;  %v320_v4 = vmul.f32 %v1035_v1, %v319_v63  ;;  %v325_v5 = vstv %s1095_s14  ;;  %s1174_s3 = sld [smem:[#allocation2 + $0x1e]]  ;;  %s1184_s1 = sld [smem:[#allocation2 + $0x1f]] }
  0x26   :  { %v227_v6 = vadd.f32 %v226_v2, %v1061_v12  ;;  %v235_v7 = vadd.f32 %v234_v3, %v1070_v16  ;;  %v242_v8 = vstv %s1113_s17  ;;  %v250_v9 = vstv %s1115_s18  ;;  %s1176_s4 = sld [smem:[#allocation2 + $0x2e]]  ;;  %s1186_s5 = sld [smem:[#allocation2 + $0x2f]] }
  0x27   :  { %v243_v10 = vadd.f32 %v242_v8, %v1077_v20  ;;  %v251_v11 = vadd.f32 %v250_v9, %v249_v28  ;;  %v258_v13 = vstv %s1119_s19  ;;  %v266_v14 = vstv %s1121_s0  ;;  %s1192_s6 = sld [smem:[#allocation2 + $0x30]]  ;;  %s1197_s7 = sld [smem:[#allocation2 + $0x31]] }
  0x28   :  { %v1169_v12 = vmax.f32 %v227_v6, 0.0  ;;  %v1171_v15 = vmax.f32 %v235_v7, 0.0  ;;  %v259_v16 = vadd.f32 %v258_v13, %v1097_v32  ;;  %v267_v17 = vadd.f32 %v266_v14, %v265_v36  ;;  %s1199_s8 = sld [smem:[#allocation2 + $0x32]]  ;;  %s1205_s9 = sld [smem:[#allocation2 + $0x33]] }
  0x29   :  { %v1178_v18 = vmax.f32 %v243_v10, 0.0  ;;  %v1180_v19 = vmax.f32 %v251_v11, 0.0  ;;  %v274_v20 = vstv %s1127_s20  ;;  %v282_v21 = vstv %s1129_s21  ;;  %s1209_s10 = sld [smem:[#allocation2 + $0x34]]  ;;  %s1211_s11 = sld [smem:[#allocation2 + $0x35]] }
  0x2a   :  { %v1188_v22 = vmax.f32 %v259_v16, 0.0  ;;  %v1190_v23 = vmax.f32 %v267_v17, 0.0  ;;  %v275_v24 = vadd.f32 %v274_v20, %v273_v44  ;;  %v283_v25 = vadd.f32 %v282_v21, %v281_v45  ;;  %s1222_s12 = sld [smem:[#allocation2 + $0x36]]  ;;  %s1224_s13 = sld [smem:[#allocation2 + $0x37]] }
  0x2b   :  { %v290_v26 = vstv %s1134_s22  ;;  %v298_v27 = vstv %s1136_s23  ;;  %v306_v28 = vstv %s1141_s24  ;;  %v313_v29 = vadd.f32 %v312_v61, %v310_v57  ;;  %s1231_s14 = sld [smem:[#allocation2 + $0x38]]  ;;  %s1238_s15 = sld [smem:[#allocation2 + $0x39]] }
  0x2c   :  { %v1201_v30 = vmax.f32 %v275_v24, 0.0  ;;  %v1203_v31 = vmax.f32 %v283_v25, 0.0  ;;  %v291_v32 = vadd.f32 %v290_v26, %v289_v52  ;;  %v299_v33 = vadd.f32 %v298_v27, %v297_v56  ;;  %s1240_s16 = sld [smem:[#allocation2 + $0x3a]]  ;;  %s1245_s17 = sld [smem:[#allocation2 + $0x3b]] }
  0x2d   :  { %v307_v34 = vadd.f32 %v306_v28, %v305_v60  ;;  %v314_v35 = vstv %s1146_s25  ;;  %v321_v36 = vadd.f32 %v320_v4, %v318_v62  ;;  %v322_v37 = vstv %s1148_s26  ;;  %s1250_s18 = sld [smem:[#allocation2 + $0x3c]]  ;;  %s1252_s19 = sld [smem:[#allocation2 + $0x3d]] }
  0x2e   :  { %v1213_v38 = vmax.f32 %v291_v32, 0.0  ;;  %v1215_v39 = vmax.f32 %v299_v33, 0.0  ;;  %v315_v40 = vadd.f32 %v314_v35, %v313_v29  ;;  %v326_v41 = vmul.f32 %v325_v5, %v1030_v0  ;;  %s1257_s0 = sld [smem:[#allocation2 + $0x3e]]  ;;  %s1261_s20 = sld [smem:[#allocation2 + $0x3f]] }
  0x2f   :  { %v1218_v42 = vmax.f32 %v307_v34, 0.0  ;;  %v323_v43 = vadd.f32 %v322_v37, %v321_v36  ;;  %v327_v44 = vstv %s1158_s27  ;;  %v330_v45 = vstv %s1160_s28  ;;  %s1263_s21 = sld [smem:[#allocation2 + $0x40]]  ;;  %s1273_s22 = sld [smem:[#allocation2 + $0x41]] }
  0x30   :  { %v1226_v46 = vmax.f32 %v315_v40, 0.0  ;;  %v328_v47 = vmul.f32 %v1035_v1, %v327_v44  ;;  %v333_v48 = vstv %s1165_s29  ;;  %v335_v49 = vstv %s1167_s30  ;;  %s1275_s23 = sld [smem:[#allocation2 + $0x42]]  ;;  %s1281_s24 = sld [smem:[#allocation2 + $0x43]] }
  0x31   :  { %v1233_v50 = vmax.f32 %v323_v43, 0.0  ;;  %v334_v51 = vmul.f32 %v333_v48, %v1030_v0  ;;  %v336_v52 = vmul.f32 %v1035_v1, %v335_v49  ;;  %v338_v53 = vstv %s1176_s4  ;;  %s1283_s25 = sld [smem:[#allocation2 + $0x44]]  ;;  %s1289_s26 = sld [smem:[#allocation2 + $0x45]] }
  0x32   :  { %v329_v54 = vadd.f32 %v328_v47, %v326_v41  ;;  %v341_v55 = vstv %s1174_s3  ;;  %v343_v56 = vstv %s1184_s1  ;;  %v346_v57 = vstv %s1186_s5  ;;  %s1291_s27 = sld [smem:[#allocation2 + $0x46]]  ;;  %s1299_s28 = sld [smem:[#allocation2 + $0x47]] }
  0x33   :  { %v337_v58 = vadd.f32 %v336_v52, %v334_v51  ;;  %v342_v59 = vmul.f32 %v341_v55, %v1030_v0  ;;  %v344_v60 = vmul.f32 %v1035_v1, %v343_v56  ;;  %v349_v61 = vstv %s1192_s6  ;;  %s1304_s29 = sld [smem:[#allocation2 + $0x48]]  ;;  %s1309_s30 = sld [smem:[#allocation2 + $0x49]] }
  0x34   :  { %v331_v62 = vadd.f32 %v330_v45, %v329_v54  ;;  %v350_v63 = vmul.f32 %v349_v61, %v1169_v12  ;;  %v351_v2 = vstv %s1197_s7  ;;  %v354_v3 = vstv %s1199_s8  ;;  %s1311_s3 = sld [smem:[#allocation2 + $0x4a]]  ;;  %s1316_s4 = sld [smem:[#allocation2 + $0x4b]] }
  0x35   :  { %v339_v4 = vadd.f32 %v338_v53, %v337_v58  ;;  %v345_v5 = vadd.f32 %v344_v60, %v342_v59  ;;  %v352_v0 = vmul.f32 %v351_v2, %v1171_v15  ;;  %v355_v1 = vmul.f32 %v354_v3, %v1178_v18  ;;  %s1320_s1 = sld [smem:[#allocation2 + $0x4c]]  ;;  %s1322_s5 = sld [smem:[#allocation2 + $0x4d]] }
  0x36   :  { %v1265_v6 = vmax.f32 %v331_v62, 0.0  ;;  %v357_v7 = vstv %s1205_s9  ;;  %v360_v8 = vstv %s1209_s10  ;;  %v362_v9 = vstv %s1211_s11  ;;  %s1327_s6 = sld [smem:[#allocation2 + $0x4e]]  ;;  %s1331_s7 = sld [smem:[#allocation2 + $0x4f]] }
  0x37   :  { %v1270_v10 = vmax.f32 %v339_v4, 0.0  ;;  %v347_v11 = vadd.f32 %v346_v57, %v345_v5  ;;  %v353_v13 = vadd.f32 %v352_v0, %v350_v63  ;;  %v358_v14 = vmul.f32 %v357_v7, %v1180_v19  ;;  %s1333_s8 = sld [smem:[#allocation2 + $0x50]]  ;;  %s1339_s9 = sld [smem:[#allocation2 + $0x51]] }
  0x38   :  { %v361_v16 = vmul.f32 %v360_v8, %v1188_v22  ;;  %v363_v17 = vmul.f32 %v362_v9, %v1190_v23  ;;  %v365_v20 = vstv %s1222_s12  ;;  %v368_v21 = vstv %s1224_s13  ;;  %s1342_s10 = sld [smem:[#allocation2 + $0x52]]  ;;  %s1344_s11 = sld [smem:[#allocation2 + $0x53]] }
  0x39   :  { %v1285_v24 = vmax.f32 %v347_v11, 0.0  ;;  %v356_v25 = vadd.f32 %v355_v1, %v353_v13  ;;  %v366_v26 = vmul.f32 %v365_v20, %v1201_v30  ;;  %v369_v27 = vmul.f32 %v368_v21, %v1203_v31  ;;  %s1350_s12 = sld [smem:[#allocation2 + $0x54]]  ;;  %s1356_s13 = sld [smem:[#allocation2 + $0x55]] }
  0x3a   :  { %v364_v28 = vadd.f32 %v363_v17, %v361_v16  ;;  %v371_v29 = vstv %s1231_s14  ;;  %v373_v32 = vstv %s1238_s15  ;;  %v376_v33 = vstv %s1240_s16  ;;  %s1358_s14 = sld [smem:[#allocation2 + $0x56]]  ;;  %s1366_s15 = sld [smem:[#allocation2 + $0x57]] }
  0x3b   :  { %v359_v34 = vadd.f32 %v358_v14, %v356_v25  ;;  %v372_v35 = vmul.f32 %v371_v29, %v1213_v38  ;;  %v374_v36 = vmul.f32 %v373_v32, %v1215_v39  ;;  %v377_v37 = vmul.f32 %v376_v33, %v1218_v42  ;;  %s1368_s16 = sld [smem:[#allocation2 + $0x58]] }
  0x3c   :  { %v367_v40 = vadd.f32 %v366_v26, %v364_v28  ;;  %v379_v41 = vstv %s1245_s17  ;;  %v382_v43 = vstv %s1250_s18  ;;  %v384_v44 = vstv %s1252_s19  ;;  %s1373_s17 = sld [smem:[#allocation2 + $0x59]]  ;;  %s1378_s18 = sld [smem:[#allocation2 + $0x5a]] }
  0x3d   :  { %v375_v45 = vadd.f32 %v374_v36, %v372_v35  ;;  %v380_v47 = vmul.f32 %v379_v41, %v1226_v46  ;;  %v383_v48 = vmul.f32 %v382_v43, %v1233_v50  ;;  %v385_v49 = vmul.f32 %v384_v44, %v1265_v6  ;;  %s1380_s19 = sld [smem:[#allocation2 + $0x5b]] }
  0x3e   :  { %v370_v51 = vadd.f32 %v369_v27, %v367_v40  ;;  %v387_v52 = vstv %s1257_s0  ;;  %v390_v53 = vstv %s1261_s20  ;;  %v399_v54 = vstv %s1263_s21  ;;  %s1385_s0 = sld [smem:[#allocation2 + $0x5c]]  ;;  %s1389_s20 = sld [smem:[#allocation2 + $0x5d]] }
  0x3f   :  { %v378_v55 = vadd.f32 %v377_v37, %v375_v45  ;;  %v386_v56 = vadd.f32 %v385_v49, %v383_v48  ;;  %v388_v57 = vmul.f32 %v387_v52, %v1270_v10  ;;  %v391_v58 = vmul.f32 %v390_v53, %v1285_v24  ;;  %s1391_s21 = sld [smem:[#allocation2 + $0x5e]] }
  0x40   :  { %v393_v59 = vadd.f32 %v370_v51, %v359_v34  ;;  %v400_v60 = vmul.f32 %v399_v54, %v1169_v12  ;;  %v401_v61 = vstv %s1273_s22  ;;  %v404_v62 = vstv %s1275_s23  ;;  %s1396_s22 = sld [smem:[#allocation2 + $0x5f]]  ;;  %s1400_s23 = sld [smem:[#allocation2 + $0x60]] }
  0x41   :  { %v381_v63 = vadd.f32 %v380_v47, %v378_v55  ;;  %v389_v2 = vadd.f32 %v388_v57, %v386_v56  ;;  %v402_v3 = vmul.f32 %v401_v61, %v1171_v15  ;;  %v405_v4 = vmul.f32 %v404_v62, %v1178_v18 }
  0x42   :  { %v407_v5 = vstv %s1281_s24  ;;  %v410_v0 = vstv %s1283_s25  ;;  %v412_v1 = vstv %s1289_s26  ;;  %v415_v7 = vstv %s1291_s27  ;;  %s1402_s24 = sld [smem:[#allocation2 + $0x61]]  ;;  %s1409_s25 = sld [smem:[#allocation2 + $0x62]] }
  0x43   :  { %v392_v8 = vadd.f32 %v391_v58, %v389_v2  ;;  %v394_v9 = vadd.f32 %v393_v59, %v381_v63  ;;  %v403_v11 = vadd.f32 %v402_v3, %v400_v60  ;;  %v408_v13 = vmul.f32 %v407_v5, %v1180_v19  ;;  %s1411_s26 = sld [smem:[#allocation2 + $0x63]]  ;;  %s1417_s27 = sld [smem:[#allocation2 + $0x64]] }
  0x44   :  { %v411_v14 = vmul.f32 %v410_v0, %v1188_v22  ;;  %v413_v16 = vmul.f32 %v412_v1, %v1190_v23  ;;  %v416_v17 = vmul.f32 %v415_v7, %v1201_v30  ;;  %v418_v20 = vstv %s1299_s28  ;;  %s1423_s28 = sld [smem:[#allocation2 + $0x65]] }
  0x45   :  { %v1352_v21 = vadd.f32 %v394_v9, %v392_v8  ;;  %v406_v25 = vadd.f32 %v405_v4, %v403_v11  ;;  %v419_v26 = vmul.f32 %v418_v20, %v1203_v31  ;;  %v421_v27 = vstv %s1304_s29  ;;  %s1425_s29 = sld [smem:[#allocation2 + $0x66]] }
  0x46   :  { %v414_v28 = vadd.f32 %v413_v16, %v411_v14  ;;  %v422_v29 = vmul.f32 %v421_v27, %v1213_v38  ;;  %v423_v32 = vstv %s1309_s30  ;;  %v426_v33 = vstv %s1311_s3  ;;  %s1433_s30 = sld [smem:[#allocation2 + $0x67]]  ;;  %s1435_s3 = sld [smem:[#allocation2 + $0x68]] }
  0x47   :  { %v409_v34 = vadd.f32 %v408_v13, %v406_v25  ;;  %v424_v35 = vmul.f32 %v423_v32, %v1215_v39  ;;  %v427_v36 = vmul.f32 %v426_v33, %v1218_v42  ;;  %v429_v37 = vstv %s1316_s4  ;;  %s1440_s4 = sld [smem:[#allocation2 + $0x69]] }
  0x48   :  { %v417_v40 = vadd.f32 %v416_v17, %v414_v28  ;;  %v430_v41 = vmul.f32 %v429_v37, %v1226_v46  ;;  %v432_v43 = vstv %s1320_s1  ;;  %v434_v44 = vstv %s1322_s5  ;;  %s1445_s1 = sld [smem:[#allocation2 + $0x6a]]  ;;  %s1447_s5 = sld [smem:[#allocation2 + $0x6b]] }
  0x49   :  { %v425_v45 = vadd.f32 %v424_v35, %v422_v29  ;;  %v433_v47 = vmul.f32 %v432_v43, %v1233_v50  ;;  %v435_v48 = vmul.f32 %v434_v44, %v1265_v6  ;;  %v437_v49 = vstv %s1327_s6  ;;  %s1452_s6 = sld [smem:[#allocation2 + $0x6c]] }
  0x4a   :  { %v420_v51 = vadd.f32 %v419_v26, %v417_v40  ;;  %v438_v52 = vmul.f32 %v437_v49, %v1270_v10  ;;  %v440_v53 = vstv %s1331_s7  ;;  %v449_v54 = vstv %s1333_s8  ;;  %s1454_s7 = sld [smem:[#allocation2 + $0x6d]]  ;;  %s1458_s8 = sld [smem:[#allocation2 + $0x6e]] }
  0x4b   :  { %v428_v55 = vadd.f32 %v427_v36, %v425_v45  ;;  %v436_v56 = vadd.f32 %v435_v48, %v433_v47  ;;  %v441_v57 = vmul.f32 %v440_v53, %v1285_v24  ;;  %v450_v58 = vmul.f32 %v449_v54, %v1169_v12 }
  0x4c   :  { %v443_v59 = vadd.f32 %v420_v51, %v409_v34  ;;  %v451_v60 = vstv %s1339_s9  ;;  %v454_v61 = vstv %s1342_s10  ;;  %v457_v62 = vstv %s1344_s11  ;;  %s1460_s9 = sld [smem:[#allocation2 + $0x6f]]  ;;  %s1467_s10 = sld [smem:[#allocation2 + $0x70]] }
  0x4d   :  { %v431_v63 = vadd.f32 %v430_v41, %v428_v55  ;;  %v439_v2 = vadd.f32 %v438_v52, %v436_v56  ;;  %v452_v3 = vmul.f32 %v451_v60, %v1171_v15  ;;  %v455_v4 = vmul.f32 %v454_v61, %v1178_v18  ;;  %s1469_s11 = sld [smem:[#allocation2 + $0x71]] }
  0x4e   :  { %v458_v5 = vmul.f32 %v457_v62, %v1180_v19  ;;  %v460_v0 = vstv %s1350_s12  ;;  %v462_v1 = vstv %s1356_s13  ;;  %v465_v7 = vstv %s1358_s14  ;;  %s1474_s12 = sld [smem:[#allocation2 + $0x72]]  ;;  %s1478_s13 = sld [smem:[#allocation2 + $0x73]] }
  0x4f   :  { %v442_v8 = vadd.f32 %v441_v57, %v439_v2  ;;  %v444_v9 = vadd.f32 %v443_v59, %v431_v63  ;;  %v453_v11 = vadd.f32 %v452_v3, %v450_v58  ;;  %v461_v13 = vmul.f32 %v460_v0, %v1188_v22  ;;  %s1480_s14 = sld [smem:[#allocation2 + $0x74]] }
  0x50   :  { %v463_v14 = vmul.f32 %v462_v1, %v1190_v23  ;;  %v466_v16 = vmul.f32 %v465_v7, %v1201_v30  ;;  %v468_v17 = vstv %s1366_s15  ;;  %v471_v20 = vstv %s1368_s16  ;;  %s1489_s15 = sld [smem:[#allocation2 + $0x75]]  ;;  %s1491_s16 = sld [smem:[#allocation2 + $0x76]] }
  0x51   :  { %v1419_v25 = vadd.f32 %v444_v9, %v442_v8  ;;  %v456_v26 = vadd.f32 %v455_v4, %v453_v11  ;;  %v469_v27 = vmul.f32 %v468_v17, %v1203_v31  ;;  %v472_v28 = vmul.f32 %v471_v20, %v1213_v38 }
  0x52   :  { %v464_v29 = vadd.f32 %v463_v14, %v461_v13  ;;  %v473_v32 = vstv %s1373_s17  ;;  %v476_v33 = vstv %s1378_s18  ;;  %v479_v34 = vstv %s1380_s19  ;;  %s1496_s17 = sld [smem:[#allocation2 + $0x77]]  ;;  %s1501_s18 = sld [smem:[#allocation2 + $0x78]] }
  0x53   :  { %v459_v35 = vadd.f32 %v458_v5, %v456_v26  ;;  %v474_v36 = vmul.f32 %v473_v32, %v1215_v39  ;;  %v477_v37 = vmul.f32 %v476_v33, %v1218_v42  ;;  %v480_v40 = vmul.f32 %v479_v34, %v1226_v46  ;;  %s1503_s19 = sld [smem:[#allocation2 + $0x79]] }
  0x54   :  { %v467_v41 = vadd.f32 %v466_v16, %v464_v29  ;;  %v482_v43 = vstv %s1385_s0  ;;  %v484_v44 = vstv %s1389_s20  ;;  %v487_v45 = vstv %s1391_s21  ;;  %s1511_s0 = sld [smem:[#allocation2 + $0x7a]]  ;;  %s1513_s20 = sld [smem:[#allocation2 + $0x7b]] }
  0x55   :  { %v475_v47 = vadd.f32 %v474_v36, %v472_v28  ;;  %v483_v48 = vmul.f32 %v482_v43, %v1233_v50  ;;  %v485_v49 = vmul.f32 %v484_v44, %v1265_v6  ;;  %v488_v51 = vmul.f32 %v487_v45, %v1270_v10  ;;  %s1519_s21 = sld [smem:[#allocation2 + $0x7c]] }
  0x56   :  { %v470_v52 = vadd.f32 %v469_v27, %v467_v41  ;;  %v490_v53 = vstv %s1396_s22  ;;  %v499_v54 = vstv %s1400_s23  ;;  %v501_v55 = vstv %s1402_s24  ;;  %s1522_s22 = sld [smem:[#allocation2 + $0x7d]]  ;;  %s1524_s23 = sld [smem:[#allocation2 + $0x7e]] }
  0x57   :  { %v478_v56 = vadd.f32 %v477_v37, %v475_v47  ;;  %v486_v57 = vadd.f32 %v485_v49, %v483_v48  ;;  %v491_v58 = vmul.f32 %v490_v53, %v1285_v24  ;;  %v500_v59 = vmul.f32 %v499_v54, %v1169_v12  ;;  %s1532_s24 = sld [smem:[#allocation2 + $0x7f]] }
  0x58   :  { %v493_v60 = vadd.f32 %v470_v52, %v459_v35  ;;  %v502_v61 = vmul.f32 %v501_v55, %v1171_v15  ;;  %v504_v62 = vstv %s1409_s25  ;;  %v507_v63 = vstv %s1411_s26  ;;  %s1537_s25 = sld [smem:[#allocation2 + $0xb0]]  ;;  %s1539_s26 = sld [smem:[#allocation2 + $0xb1]] }
  0x59   :  { %v481_v2 = vadd.f32 %v480_v40, %v478_v56  ;;  %v489_v3 = vadd.f32 %v488_v51, %v486_v57  ;;  %v505_v4 = vmul.f32 %v504_v62, %v1178_v18  ;;  %v508_v5 = vmul.f32 %v507_v63, %v1180_v19 }
  0x5a   :  { %v503_v0 = vadd.f32 %v502_v61, %v500_v59  ;;  %v510_v1 = vstv %s1417_s27  ;;  %v512_v7 = vstv %s1423_s28  ;;  %v515_v8 = vstv %s1425_s29  ;;  %s1543_s27 = sld [smem:[#allocation2 + $0xb2]]  ;;  %s1545_s28 = sld [smem:[#allocation2 + $0xb3]] }
  0x5b   :  { %v492_v9 = vadd.f32 %v491_v58, %v489_v3  ;;  %v494_v11 = vadd.f32 %v493_v60, %v481_v2  ;;  %v511_v13 = vmul.f32 %v510_v1, %v1188_v22  ;;  %v513_v14 = vmul.f32 %v512_v7, %v1190_v23  ;;  %s1552_s29 = sld [smem:[#allocation2 + $0x80]] }
  0x5c   :  { %v506_v16 = vadd.f32 %v505_v4, %v503_v0  ;;  %v516_v17 = vmul.f32 %v515_v8, %v1201_v30  ;;  %v518_v20 = vstv %s1433_s30  ;;  %v521_v26 = vstv %s1435_s3  ;;  %s1554_s30 = sld [smem:[#allocation2 + $0x81]]  ;;  %s1559_s3 = sld [smem:[#allocation2 + $0x82]] }
  0x5d   :  { %v1485_v27 = vadd.f32 %v494_v11, %v492_v9  ;;  %v514_v28 = vadd.f32 %v513_v14, %v511_v13  ;;  %v519_v29 = vmul.f32 %v518_v20, %v1203_v31  ;;  %v522_v32 = vmul.f32 %v521_v26, %v1213_v38 }
  0x5e   :  { %v509_v33 = vadd.f32 %v508_v5, %v506_v16  ;;  %v523_v34 = vstv %s1440_s4  ;;  %v526_v35 = vstv %s1445_s1  ;;  %v529_v36 = vstv %s1447_s5  ;;  %s1561_s4 = sld [smem:[#allocation2 + $0x83]]  ;;  %s1566_s1 = sld [smem:[#allocation2 + $0x84]] }
  0x5f   :  { %v517_v37 = vadd.f32 %v516_v17, %v514_v28  ;;  %v524_v40 = vmul.f32 %v523_v34, %v1215_v39  ;;  %v527_v41 = vmul.f32 %v526_v35, %v1218_v42  ;;  %v530_v43 = vmul.f32 %v529_v36, %v1226_v46  ;;  %s1571_s5 = sld [smem:[#allocation2 + $0x85]] }
  0x60   :  { %v532_v44 = vstv %s1452_s6  ;;  %v534_v45 = vstv %s1454_s7  ;;  %v537_v47 = vstv %s1458_s8  ;;  %v540_v48 = vstv %s1460_s9  ;;  %s1573_s6 = sld [smem:[#allocation2 + $0x86]]  ;;  %s1578_s7 = sld [smem:[#allocation2 + $0x87]] }
  0x61   :  { %v520_v49 = vadd.f32 %v519_v29, %v517_v37  ;;  %v525_v51 = vadd.f32 %v524_v40, %v522_v32  ;;  %v533_v52 = vmul.f32 %v532_v44, %v1233_v50  ;;  %v535_v53 = vmul.f32 %v534_v45, %v1265_v6  ;;  %s1588_s8 = sld [smem:[#allocation2 + $0x88]]  ;;  %s1590_s9 = sld [smem:[#allocation2 + $0x89]] }
  0x62   :  { %v538_v54 = vmul.f32 %v537_v47, %v1270_v10  ;;  %v541_v55 = vmul.f32 %v540_v48, %v1285_v24  ;;  %v549_v56 = vstv %s1467_s10  ;;  %v551_v57 = vstv %s1469_s11  ;;  %s1597_s10 = sld [smem:[#allocation2 + $0x8a]]  ;;  %s1599_s11 = sld [smem:[#allocation2 + $0x8b]] }
  0x63   :  { %v528_v58 = vadd.f32 %v527_v41, %v525_v51  ;;  %v536_v59 = vadd.f32 %v535_v53, %v533_v52  ;;  %v543_v60 = vadd.f32 %v520_v49, %v509_v33  ;;  %v550_v61 = vmul.f32 %v549_v56, %v1169_v12 }
  0x64   :  { %v552_v62 = vmul.f32 %v551_v57, %v1171_v15  ;;  %v554_v63 = vstv %s1474_s12  ;;  %v557_v2 = vstv %s1478_s13  ;;  %v560_v3 = vstv %s1480_s14  ;;  %s1605_s12 = sld [smem:[#allocation2 + $0xb4]]  ;;  %s1611_s14 = sld [smem:[#allocation2 + $0x8d]] }
  0x65   :  { %v531_v4 = vadd.f32 %v530_v43, %v528_v58  ;;  %v539_v5 = vadd.f32 %v538_v54, %v536_v59  ;;  %v555_v0 = vmul.f32 %v554_v63, %v1178_v18  ;;  %v558_v1 = vmul.f32 %v557_v2, %v1180_v19  ;;  %s1609_s13 = sld [smem:[#allocation2 + $0x8c]] }
  0x66   :  { %v553_v7 = vadd.f32 %v552_v62, %v550_v61  ;;  %v561_v8 = vmul.f32 %v560_v3, %v1188_v22  ;;  %v562_v9 = vstv %s1489_s15  ;;  %v565_v11 = vstv %s1491_s16  ;;  %s1617_s15 = sld [smem:[#allocation2 + $0x8e]]  ;;  %s1621_s16 = sld [smem:[#allocation2 + $0x8f]] }
  0x67   :  { %v542_v13 = vadd.f32 %v541_v55, %v539_v5  ;;  %v544_v14 = vadd.f32 %v543_v60, %v531_v4  ;;  %v563_v16 = vmul.f32 %v562_v9, %v1190_v23  ;;  %v566_v17 = vmul.f32 %v565_v11, %v1201_v30 }
  0x68   :  { %v556_v20 = vadd.f32 %v555_v0, %v553_v7  ;;  %v568_v26 = vstv %s1496_s17  ;;  %v571_v28 = vstv %s1501_s18  ;;  %v573_v29 = vstv %s1503_s19  ;;  %s1627_s17 = sld [smem:[#allocation2 + $0x90]]  ;;  %s1632_s18 = sld [smem:[#allocation2 + $0x91]] }
  0x69   :  { %v545_v32 = vadd.f32 %v544_v14, %v542_v13  ;;  %v564_v33 = vadd.f32 %v563_v16, %v561_v8  ;;  %v569_v34 = vmul.f32 %v568_v26, %v1203_v31  ;;  %v572_v35 = vmul.f32 %v571_v28, %v1213_v38  ;;  %s1634_s19 = sld [smem:[#allocation2 + $0x92]] }
  0x6a   :  { %v559_v36 = vadd.f32 %v558_v1, %v556_v20  ;;  %v574_v37 = vmul.f32 %v573_v29, %v1215_v39  ;;  %v576_v40 = vstv %s1511_s0  ;;  %v579_v41 = vstv %s1513_s20  ;;  %s1640_s0 = sld [smem:[#allocation2 + $0x93]]  ;;  %s1643_s20 = sld [smem:[#allocation2 + $0x94]] }
  0x6b   :  { %v567_v43 = vadd.f32 %v566_v17, %v564_v33  ;;  %v577_v44 = vmul.f32 %v576_v40, %v1218_v42  ;;  %v580_v45 = vmul.f32 %v579_v41, %v1226_v46  ;;  %v582_v47 = vstv %s1519_s21  ;;  %s1645_s21 = sld [smem:[#allocation2 + $0x95]] }
  0x6c   :  { %v575_v48 = vadd.f32 %v574_v37, %v572_v35  ;;  %v583_v49 = vmul.f32 %v582_v47, %v1233_v50  ;;  %v584_v51 = vstv %s1522_s22  ;;  %v587_v52 = vstv %s1524_s23  ;;  %s1651_s22 = sld [smem:[#allocation2 + $0x96]]  ;;  %s1653_s23 = sld [smem:[#allocation2 + $0x97]] }
  0x6d   :  { %v396_v53 = vstv %s1537_s25  ;;  %v446_v54 = vstv %s1539_s26  ;;  %v570_v55 = vadd.f32 %v569_v34, %v567_v43  ;;  %v585_v56 = vmul.f32 %v584_v51, %v1265_v6  ;;  %s1659_s25 = sld [smem:[#allocation2 + $0x99]]  ;;  %s1664_s26 = sld [smem:[#allocation2 + $0xb5]] }
  0x6e   :  { %v1581_v57 = vadd.f32 %v396_v53, %v1352_v21  ;;  %v1584_v58 = vadd.f32 %v446_v54, %v1419_v25  ;;  %v496_v59 = vstv %s1543_s27  ;;  %v546_v60 = vstv %s1545_s28  ;;  %s1669_s27 = sld [smem:[#allocation2 + $0x9a]]  ;;  %s1675_s28 = sld [smem:[#allocation2 + $0x9b]] }
  0x6f   :  { %v578_v61 = vadd.f32 %v577_v44, %v575_v48  ;;  %v586_v62 = vadd.f32 %v585_v56, %v583_v49  ;;  %v1593_v63 = vadd.f32 %v496_v59, %v1485_v27  ;;  %v588_v2 = vmul.f32 %v587_v52, %v1270_v10 }
  0x70   :  { %v590_v21 = vstv %s1532_s24  ;;  %v398_v25 = vmax.f32 %v1581_v57, 0.0  ;;  %v1602_v3 = vadd.f32 %v546_v60, %v545_v32  ;;  %v448_v27 = vmax.f32 %v1584_v58, 0.0  ;;  %s1657_s24 = sld [smem:[#allocation2 + $0x98]] }
  0x71   :  { %v581_v4 = vadd.f32 %v580_v45, %v578_v61  ;;  %v591_v5 = vmul.f32 %v590_v21, %v1285_v24  ;;  %v589_v0 = vadd.f32 %v588_v2, %v586_v62  ;;  %v593_v1 = vadd.f32 %v570_v55, %v559_v36 }
  0x72   :  { %v599_v7 = vstv %s1552_s29  ;;  %v601_v9 = vstv %s1554_s30  ;;  %v604_v11 = vstv %s1559_s3  ;;  %v607_v13 = vstv %s1561_s4  ;;  %s1679_s29 = sld [smem:[#allocation2 + $0x9c]]  ;;  %s1681_s30 = sld [smem:[#allocation2 + $0x9d]] }
  0x73   :  { %v600_v8 = vmul.f32 %v599_v7, %v1169_v12  ;;  %v592_v14 = vadd.f32 %v591_v5, %v589_v0  ;;  %v594_v16 = vadd.f32 %v593_v1, %v581_v4  ;;  %v602_v17 = vmul.f32 %v601_v9, %v1171_v15  ;;  %s1689_s3 = sld [smem:[#allocation2 + $0x9e]]  ;;  %s1691_s4 = sld [smem:[#allocation2 + $0x9f]] }
  0x74   :  { %v605_v20 = vmul.f32 %v604_v11, %v1178_v18  ;;  %v498_v26 = vmax.f32 %v1593_v63, 0.0  ;;  %v610_v28 = vstv %s1566_s1  ;;  %v612_v29 = vstv %s1571_s5  ;;  %s1698_s1 = sld [smem:[#allocation2 + $0xa0]]  ;;  %s1700_s5 = sld [smem:[#allocation2 + $0xa1]] }
  0x75   :  { %v615_v32 = vstv %s1573_s6  ;;  %v603_v33 = vadd.f32 %v602_v17, %v600_v8  ;;  %v608_v34 = vmul.f32 %v607_v13, %v1180_v19  ;;  %v611_v35 = vmul.f32 %v610_v28, %v1188_v22  ;;  %s1706_s6 = sld [smem:[#allocation2 + $0xa2]] }
  0x76   :  { %v613_v36 = vmul.f32 %v612_v29, %v1190_v23  ;;  %v616_v37 = vmul.f32 %v615_v32, %v1201_v30  ;;  %v618_v40 = vstv %s1578_s7  ;;  %v621_v41 = vstv %s1588_s8  ;;  %s1708_s7 = sld [smem:[#allocation2 + $0xa3]]  ;;  %s1712_s8 = sld [smem:[#allocation2 + $0xa4]] }
  0x77   :  { %v623_v43 = vstv %s1590_s9  ;;  %v595_v44 = vadd.f32 %v594_v16, %v592_v14  ;;  %v606_v45 = vadd.f32 %v605_v20, %v603_v33  ;;  %v619_v48 = vmul.f32 %v618_v40, %v1203_v31  ;;  %s1718_s9 = sld [smem:[#allocation2 + $0xa5]] }
  0x78   :  { %v614_v47 = vadd.f32 %v613_v36, %v611_v35  ;;  %v622_v49 = vmul.f32 %v621_v41, %v1213_v38  ;;  %v624_v51 = vmul.f32 %v623_v43, %v1215_v39  ;;  %v626_v52 = vstv %s1597_s10  ;;  %s1720_s10 = sld [smem:[#allocation2 + $0xa6]] }
  0x79   :  { %v629_v53 = vstv %s1599_s11  ;;  %v596_v54 = vstv %s1605_s12  ;;  %v609_v55 = vadd.f32 %v608_v34, %v606_v45  ;;  %v627_v59 = vmul.f32 %v626_v52, %v1218_v42  ;;  %s1723_s11 = sld [smem:[#allocation2 + $0xa7]]  ;;  %s1728_s12 = sld [smem:[#allocation2 + $0xa8]] }
  0x7a   :  { %v617_v56 = vadd.f32 %v616_v37, %v614_v47  ;;  %v625_v60 = vadd.f32 %v624_v51, %v622_v49  ;;  %v630_v61 = vmul.f32 %v629_v53, %v1226_v46  ;;  %v632_v62 = vstv %s1609_s13  ;;  %s1730_s13 = sld [smem:[#allocation2 + $0xa9]] }
  0x7b   :  { %v634_v2 = vstv %s1611_s14  ;;  %v633_v4 = vmul.f32 %v632_v62, %v1233_v50  ;;  %v637_v0 = vstv %s1617_s15  ;;  %v1671_v1 = vadd.f32 %v596_v54, %v595_v44  ;;  %s1735_s14 = sld [smem:[#allocation2 + $0xaa]]  ;;  %s1740_s15 = sld [smem:[#allocation2 + $0xab]] }
  0x7c   :  { %v620_v21 = vadd.f32 %v619_v48, %v617_v56  ;;  %v635_v5 = vmul.f32 %v634_v2, %v1265_v6  ;;  %v628_v7 = vadd.f32 %v627_v59, %v625_v60  ;;  %v638_v8 = vmul.f32 %v637_v0, %v1270_v10 }
  0x7d   :  { %v640_v9 = vstv %s1621_s16  ;;  %v649_v16 = vstv %s1627_s17  ;;  %v651_v28 = vstv %s1632_s18  ;;  %v654_v29 = vstv %s1634_s19  ;;  %s1742_s16 = sld [smem:[#allocation2 + $0xb6]]  ;;  %s1748_s17 = sld [smem:[#allocation2 + $0xac]] }
  0x7e   :  { %v636_v11 = vadd.f32 %v635_v5, %v633_v4  ;;  %v641_v13 = vmul.f32 %v640_v9, %v1285_v24  ;;  %v643_v14 = vadd.f32 %v620_v21, %v609_v55  ;;  %v631_v17 = vadd.f32 %v630_v61, %v628_v7  ;;  %s1752_s18 = sld [smem:[#allocation2 + $0xad]]  ;;  %s1754_s19 = sld [smem:[#allocation2 + $0xae]] }
  0x7f   :  { %v650_v20 = vmul.f32 %v649_v16, %v1169_v12  ;;  %v652_v33 = vmul.f32 %v651_v28, %v1171_v15  ;;  %v655_v34 = vmul.f32 %v654_v29, %v1178_v18  ;;  %v657_v35 = vstv %s1640_s0  ;;  %s1762_s0 = sld [smem:[#allocation2 + $0xaf]] }
  0x80   :  { %v639_v32 = vadd.f32 %v638_v8, %v636_v11  ;;  %v644_v36 = vadd.f32 %v643_v14, %v631_v17  ;;  %v658_v37 = vmul.f32 %v657_v35, %v1180_v19  ;;  %v660_v40 = vstv %s1643_s20  ;;  %s1767_s20 = sld [smem:[#allocation2 + $0xb8]] }
  0x81   :  { %v662_v41 = vstv %s1645_s21  ;;  %v653_v44 = vadd.f32 %v652_v33, %v650_v20  ;;  %v661_v45 = vmul.f32 %v660_v40, %v1188_v22  ;;  %v665_v48 = vstv %s1651_s22  ;;  %s1772_s21 = sld [smem:[#allocation2 + $0xb9]]  ;;  %s1774_s22 = sld [smem:[#allocation2 + $0xba]] }
  0x82   :  { %v642_v43 = vadd.f32 %v641_v13, %v639_v32  ;;  %v663_v47 = vmul.f32 %v662_v41, %v1190_v23  ;;  %v668_v49 = vstv %s1653_s23  ;;  %v671_v51 = vstv %s1657_s24  ;;  %s1781_s23 = sld [smem:[#allocation2 + $0xbc]]  ;;  %s1783_s24 = sld [smem:[#allocation2 + $0xbd]] }
  0x83   :  { %v673_v52 = vstv %s1659_s25  ;;  %v646_v53 = vstv %s1664_s26  ;;  %v656_v54 = vadd.f32 %v655_v34, %v653_v44  ;;  %v666_v56 = vmul.f32 %v665_v48, %v1201_v30  ;;  %s1789_s25 = sld [smem:[#allocation2 + $0xb7]]  ;;  %s1793_s26 = sld [smem:[#allocation2 + $0xbb]] }
  0x84   :  { %v664_v55 = vadd.f32 %v663_v47, %v661_v45  ;;  %v669_v59 = vmul.f32 %v668_v49, %v1203_v31  ;;  %v672_v60 = vmul.f32 %v671_v51, %v1213_v38  ;;  %v674_v61 = vmul.f32 %v673_v52, %v1215_v39 }
  0x85   :  { %v676_v62 = vstv %s1669_s27  ;;  %v645_v2 = vadd.f32 %v644_v36, %v642_v43  ;;  %v659_v21 = vadd.f32 %v658_v37, %v656_v54  ;;  %v679_v7 = vstv %s1675_s28  ;;  %s1795_s27 = sld [smem:[#allocation2 + $0xbe]]  ;;  %s1807_s28 = sld [smem:[#allocation2 + $0xbf]] }
  0x86   :  { %v667_v4 = vadd.f32 %v666_v56, %v664_v55  ;;  %v677_v5 = vmul.f32 %v676_v62, %v1218_v42  ;;  %v675_v0 = vadd.f32 %v674_v61, %v672_v60  ;;  %v682_v8 = vstv %s1679_s29  ;;  %s978_s29 = sld [smem:[#allocation2 + $0xc0]] }
  0x87   :  { %v684_v9 = vstv %s1681_s30  ;;  %v598_v11 = vmax.f32 %v1671_v1, 0.0  ;;  %v680_v14 = vmul.f32 %v679_v7, %v1226_v46  ;;  %v683_v16 = vmul.f32 %v682_v8, %v1233_v50 }
  0x88   :  { %v670_v13 = vadd.f32 %v669_v59, %v667_v4  ;;  %v678_v17 = vadd.f32 %v677_v5, %v675_v0  ;;  %v685_v20 = vmul.f32 %v684_v9, %v1265_v6  ;;  %v687_v28 = vstv %s1689_s3 }
  0x89   :  { %v690_v29 = vstv %s1691_s4  ;;  %v1744_v32 = vadd.f32 %v646_v53, %v645_v2  ;;  %v688_v33 = vmul.f32 %v687_v28, %v1270_v10  ;;  %v699_v40 = vstv %s1698_s1 }
  0x8a   :  { %v691_v34 = vmul.f32 %v690_v29, %v1285_v24  ;;  %v693_v35 = vadd.f32 %v670_v13, %v659_v21  ;;  %v681_v36 = vadd.f32 %v680_v14, %v678_v17  ;;  %v686_v37 = vadd.f32 %v685_v20, %v683_v16 }
  0x8b   :  { %v701_v41 = vstv %s1700_s5  ;;  %v700_v43 = vmul.f32 %v699_v40, %v1169_v12  ;;  %v704_v45 = vstv %s1706_s6  ;;  %v707_v47 = vstv %s1708_s7 }
  0x8c   :  { %v702_v44 = vmul.f32 %v701_v41, %v1171_v15  ;;  %v689_v48 = vadd.f32 %v688_v33, %v686_v37  ;;  %v694_v49 = vadd.f32 %v693_v35, %v681_v36  ;;  %v705_v51 = vmul.f32 %v704_v45, %v1178_v18 }
  0x8d   :  { %v708_v52 = vmul.f32 %v707_v47, %v1180_v19  ;;  %v710_v54 = vstv %s1712_s8  ;;  %v712_v55 = vstv %s1718_s9  ;;  %v715_v56 = vstv %s1720_s10 }
  0x8e   :  { %v703_v53 = vadd.f32 %v702_v44, %v700_v43  ;;  %v692_v12 = vadd.f32 %v691_v34, %v689_v48  ;;  %v711_v15 = vmul.f32 %v710_v54, %v1188_v22  ;;  %v713_v59 = vmul.f32 %v712_v55, %v1190_v23 }
  0x8f   :  { %v716_v18 = vmul.f32 %v715_v56, %v1201_v30  ;;  %v718_v60 = vstv %s1723_s11  ;;  %v721_v61 = vstv %s1728_s12  ;;  %v723_v62 = vstv %s1730_s13 }
  0x90   :  { %v706_v19 = vadd.f32 %v705_v51, %v703_v53  ;;  %v695_v2 = vadd.f32 %v694_v49, %v692_v12  ;;  %v714_v21 = vadd.f32 %v713_v59, %v711_v15  ;;  %v719_v4 = vmul.f32 %v718_v60, %v1203_v31 }
  0x91   :  { %v722_v22 = vmul.f32 %v721_v61, %v1213_v38  ;;  %v696_v23 = vstv %s1742_s16  ;;  %v724_v30 = vmul.f32 %v723_v62, %v1215_v39  ;;  %v726_v5 = vstv %s1735_s14 }
  0x92   :  { %v729_v0 = vstv %s1740_s15  ;;  %v709_v7 = vadd.f32 %v708_v52, %v706_v19  ;;  %v717_v8 = vadd.f32 %v716_v18, %v714_v21  ;;  %v727_v31 = vmul.f32 %v726_v5, %v1218_v42 }
  0x93   :  { %v730_v38 = vmul.f32 %v729_v0, %v1226_v46  ;;  %v725_v9 = vadd.f32 %v724_v30, %v722_v22  ;;  %v732_v13 = vstv %s1748_s17  ;;  %v734_v14 = vstv %s1752_s18 }
  0x94   :  { %v737_v39 = vstv %s1754_s19  ;;  %v697_v16 = vadd.f32 %v696_v23, %v695_v2  ;;  %v720_v17 = vadd.f32 %v719_v4, %v717_v8  ;;  %v733_v20 = vmul.f32 %v732_v13, %v1233_v50 }
  0x95   :  { %v735_v28 = vmul.f32 %v734_v14, %v1265_v6  ;;  %v648_v42 = vmax.f32 %v1744_v32, 0.0  ;;  %v728_v46 = vadd.f32 %v727_v31, %v725_v9  ;;  %v738_v29 = vmul.f32 %v737_v39, %v1270_v10 }
  0x96   :  { %v740_v33 = vstv %s1762_s0  ;;  %v743_v36 = vadd.f32 %v720_v17, %v709_v7  ;;  %v749_v37 = vstv %s1767_s20  ;;  %v751_v6 = vstv %s1772_s21 }
  0x97   :  { %v736_v34 = vadd.f32 %v735_v28, %v733_v20  ;;  %v741_v35 = vmul.f32 %v740_v33, %v1285_v24  ;;  %v731_v40 = vadd.f32 %v730_v38, %v728_v46  ;;  %v750_v50 = vmul.f32 %v749_v37, %v398_v25 }
  0x98   :  { %v754_v32 = vstv %s1774_s22  ;;  %v548_v10 = vmax.f32 %v1602_v3, 0.0  ;;  %v698_v41 = vmax.f32 %v697_v16, 0.0  ;;  %v752_v24 = vmul.f32 %v751_v6, %v448_v27 }
  0x99   :  { %v739_v43 = vadd.f32 %v738_v29, %v736_v34  ;;  %v744_v44 = vadd.f32 %v743_v36, %v731_v40  ;;  %v755_v45 = vmul.f32 %v754_v32, %v498_v26  ;;  %v760_v47 = vstv %s1781_s23 }
  0x9a   :  { %v762_v57 = vstv %s1783_s24  ;;  %v753_v25 = vadd.f32 %v752_v24, %v750_v50  ;;  %v761_v49 = vmul.f32 %v760_v47, %v598_v11  ;;  %v746_v52 = vstv %s1789_s25 }
  0x9b   :  { %v742_v48 = vadd.f32 %v741_v35, %v739_v43  ;;  %v763_v51 = vmul.f32 %v762_v57, %v648_v42  ;;  %v757_v3 = vstv %s1793_s26  ;;  %v765_v53 = vstv %s1795_s27 }
  0x9c   :  { %v766_v58 = vmul.f32 %v765_v53, %v698_v41  ;;  %v756_v56 = vadd.f32 %v755_v45, %v753_v25  ;;  %v758_v63 = vmul.f32 %v757_v3, %v548_v10  ;;  %v768_v26 = vstv %s1807_s28 }
  0x9d   :  { %v745_v54 = vadd.f32 %v744_v44, %v742_v48  ;;  %v764_v55 = vadd.f32 %v763_v51, %v761_v49  ;;  %v772_v60 = vstv %s978_s29 }
  0x9e   :  { %v759_v59 = vadd.f32 %v758_v63, %v756_v56 }
  0x9f   :  { %v747_v27 = vadd.f32 %v746_v52, %v745_v54  ;;  %v767_v15 = vadd.f32 %v766_v58, %v764_v55 }
  0xa1   :  { %v748_v12 = vmax.f32 %v747_v27, 0.0 }
  0xa3   :  { %v769_v18 = vmul.f32 %v768_v26, %v748_v12 }
  0xa5   :  { %v770_v19 = vadd.f32 %v769_v18, %v767_v15 }
  0xa7   :  { %v771_v1 = vadd.f32 %v770_v19, %v759_v59 }
  0xa9   :  { %v773_v11 = vadd.f32 %v772_v60, %v771_v1 }
  0xab   :  { %v980_v61 = vmul.f32 -1.442695, %v773_v11 }
  0xad   :  { %982 = vpow2.f32 %v980_v61 }
  0xb7   :  { %v983_v62 = vpop.eup %982 }
  0xb8   :  { %v777_v2 = vadd.f32 1.0, %v983_v62 }
  0xba   :  { %984 = vrcp.f32 %v777_v2 }
  0xc4   :  { %v985_v21 = vpop.eup %984 }
  0xc5   :  { %780 = vst [vmem:[%s1831_s2] sm:$0xff] %v985_v21 }
  0xc6   :  { %785 = vsyncpa [#allocation3], 1 }

</bundles_post_ra>
